<compile_context>
chip_gen: v5e
topology: v5e:2x2
jax: 0.10.0
libtpu: 0.0.40
codegen_flags: <defaults>
</compile_context>

<pallas_src>
import functools

import jax
import jax.numpy as jnp
from jax.experimental import pallas as pl
from jax.experimental.pallas import tpu as pltpu

LANE = 128
SUBLANE = 8


def _round_up(n, m):
    return ((n + m - 1) // m) * m


# -----------------------------------------------------------------------------
# Fused forward kernel: conv1 -> conv2 -> GRU -> downstream head
# -----------------------------------------------------------------------------
def _cpc_fused_kernel(p_ref, sel_ref, w1_ref, b1_ref, w2_ref, b2_ref,
                      wih_ref, bih_ref, whh_ref, bhh_ref,
                      wenc_ref, wctx_ref, bds_ref, o_ref, gi_ref,
                      *, T_enc, Bg, H, mxu_dtype):
    f32 = jnp.float32

    # --- encoder: conv1 (block-diagonal taps, one matmul) + conv2 (one matmul)
    p = p_ref[0]                                              # (T_enc*Bg, k*k*C_in)
    h1 = jnp.dot(p, w1_ref[...], preferred_element_type=f32) + b1_ref[...]
    h1 = jnp.maximum(h1, 0.0).astype(mxu_dtype)               # (T_enc*Bg, k*Cp)
    enc = jnp.dot(h1, w2_ref[...], preferred_element_type=f32) + b2_ref[...]
    enc = jnp.maximum(enc, 0.0)                               # (T_enc*Bg, Cp) f32
    enc_m = enc.astype(mxu_dtype)

    # --- GRU input projection hoisted out of the serial recurrence ----------
    gi = jnp.dot(enc_m, wih_ref[...], preferred_element_type=f32) + bih_ref[...]
    gi_ref[...] = gi.reshape(T_enc, Bg, gi.shape[-1])         # time-major VMEM scratch

    # --- mean-pool encoded over time via selector matmul (rides the MXU) ----
    enc_sum = jnp.dot(sel_ref[...], enc_m, preferred_element_type=f32)
    enc_mean = enc_sum * f32(1.0 / T_enc)                     # (Bg, Cp)

    # --- GRU recurrence: fori_loop, packed gates, h is exactly H lanes wide --
    whh = whh_ref[...]                                        # (H, Gp)
    bhh = bhh_ref[...]                                        # (1, Gp)

    def step(t, h):
        gi_t = gi_ref[t]                                      # (Bg, Gp), leading-axis index
        gh = jnp.dot(h.astype(mxu_dtype), whh,
                     preferred_element_type=f32) + bhh
        r = jax.nn.sigmoid(gi_t[:, 0:H] + gh[:, 0:H])
        z = jax.nn.sigmoid(gi_t[:, H:2 * H] + gh[:, H:2 * H])
        n = jnp.tanh(gi_t[:, 2 * H:3 * H] + r * gh[:, 2 * H:3 * H])
        return (1.0 - z) * n + z * h

    h_last = jax.lax.fori_loop(0, T_enc, step, jnp.zeros((Bg, H), f32))

    # --- downstream head ------------------------------------------------------
    logits = (jnp.dot(enc_mean.astype(mxu_dtype), wenc_ref[...],
                      preferred_element_type=f32)
              + jnp.dot(h_last.astype(mxu_dtype), wctx_ref[...],
                        preferred_element_type=f32)
              + bds_ref[...])
    o_ref[0] = logits.astype(o_ref.dtype)                     # (Bg, Np) lane-dense store


# -----------------------------------------------------------------------------
# Model wrapper: one-time weight re-layout/packing + single pallas_call per fwd
# -----------------------------------------------------------------------------
class CPCCombinedPallas:
    """JAX/Pallas equivalent of CPCCombined.forward (eval-mode frozen CPC trunk
    followed by a downstream head on (encoded_x, context))."""

    def __init__(self, params, freeze_cpc=True, mxu_dtype=jnp.bfloat16):
        # TODO(synk): freeze_cpc (torch.no_grad on the CPC trunk) only affects
        # training gradients; forward values are identical, so it is recorded
        # but unused by this inference kernel.
        self.freeze_cpc = freeze_cpc
        self.mxu_dtype = mxu_dtype
        self.stride = 2
        f32 = jnp.float32

        conv1_w = jnp.asarray(params["conv1_w"], f32)
        conv2_w = jnp.asarray(params["conv2_w"], f32)
        c_enc, c_in, k = conv1_w.shape
        hidden = params["gru_w_hh"].shape[0]
        n_classes = params["ds_b"].shape[0]
        self.c_in, self.c_enc, self.k = c_in, c_enc, k
        self.hidden, self.n_classes = hidden, n_classes

        Cp = _round_up(c_enc, LANE)          # padded encoder channel width
        Gp = _round_up(3 * hidden, LANE)     # packed r|z|n gate block width
        Np = _round_up(n_classes, LANE)      # padded logit width
        self.Cp, self.Gp, self.Np = Cp, Gp, Np
        KC, KKC = k * c_in, k * k * c_in
        self.KC, self.KKC = KC, KKC

        # conv1: (C_out, C_in, k) -> per-tap (k*C_in, Cp), block-diagonal over
        # the k conv2 taps so conv1 is ONE lane-blocked matmul.
        w1 = jnp.transpose(conv1_w, (2, 1, 0)).reshape(KC, c_enc)
        w1 = jnp.pad(w1, ((0, 0), (0, Cp - c_enc)))
        w1bd = jnp.zeros((KKC, k * Cp), f32)
        for j in range(k):
            w1bd = w1bd.at[j * KC:(j + 1) * KC, j * Cp:(j + 1) * Cp].set(w1)
        self.w1 = w1bd.astype(mxu_dtype)
        b1 = jnp.pad(jnp.asarray(params["conv1_b"], f32), (0, Cp - c_enc))
        self.b1 = jnp.tile(b1, (k,)).reshape(1, k * Cp)

        # conv2: taps stacked on the contraction axis -> ONE matmul (K = k*Cp).
        w2 = jnp.transpose(conv2_w, (2, 1, 0))               # (k, C_in, C_out)
        w2 = jnp.pad(w2, ((0, 0), (0, Cp - c_enc), (0, Cp - c_enc)))
        self.w2 = w2.reshape(k * Cp, Cp).astype(mxu_dtype)
        self.b2 = jnp.pad(jnp.asarray(params["conv2_b"], f32),
                          (0, Cp - c_enc)).reshape(1, Cp)

        # GRU: gates packed at their REAL width (r|z|n = 3*hidden lanes) in one
        # lane block; h itself is exactly `hidden` lanes wide.
        self.wih = jnp.pad(jnp.asarray(params["gru_w_ih"], f32),
                           ((0, Cp - c_enc), (0, Gp - 3 * hidden))).astype(mxu_dtype)
        self.whh = jnp.pad(jnp.asarray(params["gru_w_hh"], f32),
                           ((0, 0), (0, Gp - 3 * hidden))).astype(mxu_dtype)
        self.bih = jnp.pad(jnp.asarray(params["gru_b_ih"], f32),
                           (0, Gp - 3 * hidden)).reshape(1, Gp)
        self.bhh = jnp.pad(jnp.asarray(params["gru_b_hh"], f32),
                           (0, Gp - 3 * hidden)).reshape(1, Gp)

        # downstream head (padded rows multiply zeros; padded cols sliced off)
        self.wenc = jnp.pad(jnp.asarray(params["ds_w_enc"], f32),
                            ((0, Cp - c_enc), (0, Np - n_classes))).astype(mxu_dtype)
        self.wctx = jnp.pad(jnp.asarray(params["ds_w_ctx"], f32),
                            ((0, 0), (0, Np - n_classes))).astype(mxu_dtype)
        self.bds = jnp.pad(jnp.asarray(params["ds_b"], f32),
                           (0, Np - n_classes)).reshape(1, Np)

    def _enc_len(self, T):
        k, s = self.k, self.stride
        L1 = (T - k) // s + 1
        L2 = (L1 - k) // s + 1
        return L1, L2

    def __call__(self, X, y=None):
        B, C_in, T = X.shape
        assert C_in == self.c_in
        k, s = self.k, self.stride
        _, L2 = self._enc_len(T)

        Bg = SUBLANE                        # batch rows per grid step (one sublane tile)
        n_b = pl.cdiv(B, Bg)
        Bpad = n_b * Bg

        # Composed conv1∘conv2 receptive fields, lane-blocked by conv2 tap and
        # time-major/batch-padded rows, so the kernel sees only dense,
        # tile-aligned matmuls.
        # TODO(synk): move this im2col into the kernel with strided ref reads
        # for long sequences (see header note).
        x_btc = jnp.transpose(X, (0, 2, 1)).astype(jnp.float32)       # (B, T, C_in)
        l_idx = jnp.arange(L2)
        tap = jnp.arange(k)
        t_idx = (s * s * l_idx[:, None, None] + s * tap[None, :, None]
                 + tap[None, None, :])                                 # (L2, k, k)
        patches = x_btc[:, t_idx, :]                                   # (B, L2, k, k, C_in)
        p = patches.reshape(B, L2, self.KKC)                           # lanes (j, i, c)
        p = jnp.transpose(p, (1, 0, 2))                                # (L2, B, KKC)
        p = jnp.pad(p, ((0, 0), (0, Bpad - B), (0, 0)))
        p = p.reshape(L2, n_b, Bg, self.KKC).transpose(1, 0, 2, 3)
        p = p.reshape(n_b, L2 * Bg, self.KKC).astype(self.mxu_dtype)   # (n_b, L2*Bg, KKC)

        # per-batch time-sum selector (mean scale 1/L2 applied in-kernel in f32)
        rows = jnp.arange(Bg)[:, None]
        cols = jnp.arange(L2 * Bg)[None, :]
        sel = (cols % Bg == rows).astype(self.mxu_dtype)               # (Bg, L2*Bg)

        kernel = functools.partial(_cpc_fused_kernel, T_enc=L2, Bg=Bg,
                                   H=self.hidden, mxu_dtype=self.mxu_dtype)
        full = lambda g: (0, 0)

        out = pl.pallas_call(
            kernel,
            out_shape=jax.ShapeDtypeStruct((n_b, Bg, self.Np), jnp.float32),
            grid=(n_b,),
            in_specs=[
                pl.BlockSpec((1, L2 * Bg, self.KKC), lambda g: (g, 0, 0)),
                pl.BlockSpec(sel.shape, full),
                pl.BlockSpec(self.w1.shape, full),
                pl.BlockSpec(self.b1.shape, full),
                pl.BlockSpec(self.w2.shape, full),
                pl.BlockSpec(self.b2.shape, full),
                pl.BlockSpec(self.wih.shape, full),
                pl.BlockSpec(self.bih.shape, full),
                pl.BlockSpec(self.whh.shape, full),
                pl.BlockSpec(self.bhh.shape, full),
                pl.BlockSpec(self.wenc.shape, full),
                pl.BlockSpec(self.wctx.shape, full),
                pl.BlockSpec(self.bds.shape, full),
            ],
            out_specs=pl.BlockSpec((1, Bg, self.Np), lambda g: (g, 0, 0)),
            scratch_shapes=[pltpu.VMEM((L2, Bg, self.Gp), jnp.float32)],
            compiler_params=pltpu.CompilerParams(
                dimension_semantics=("parallel",)),
        )(p, sel, self.w1, self.b1, self.w2, self.b2,
          self.wih, self.bih, self.whh, self.bhh,
          self.wenc, self.wctx, self.bds)

        return out.reshape(n_b * Bg, self.Np)[:B, :self.n_classes]


# -----------------------------------------------------------------------------
# Parameter init and a pure-JAX reference (PyTorch semantics)
# -----------------------------------------------------------------------------
def init_params(key, c_in=4, c_enc=32, k=4, hidden=32, n_classes=8):
    keys = jax.random.split(key, 10)
    s = 0.1
    params = {
        "conv1_w": jax.random.normal(keys[0], (c_enc, c_in, k)) * s,
        "conv1_b": jax.random.normal(keys[1], (c_enc,)) * s,
        "conv2_w": jax.random.normal(keys[2], (c_enc, c_enc, k)) * s,
        "conv2_b": jax.random.normal(keys[3], (c_enc,)) * s,
        "gru_w_ih": jax.random.normal(keys[4], (c_enc, 3 * hidden)) * s,
        "gru_w_hh": jax.random.normal(keys[5], (hidden, 3 * hidden)) * s,
        "gru_b_ih": jax.random.normal(keys[6], (3 * hidden,)) * s,
        "gru_b_hh": jax.random.normal(keys[7], (3 * hidden,)) * s,
        "ds_w_enc": jax.random.normal(keys[8], (c_enc, n_classes)) * s,
        "ds_w_ctx": jax.random.normal(keys[9], (hidden, n_classes)) * s,
        "ds_b": jnp.zeros((n_classes,)),
    }
    return jax.tree.map(lambda a: a.astype(jnp.float32), params)


def _reference_forward(params, X):
    """Plain-JAX reference with PyTorch semantics (for correctness checking)."""
    def conv1d_relu(x, w, b, stride):
        B, C, T = x.shape
        C_out, _, k = w.shape
        L = (T - k) // stride + 1
        idx = jnp.arange(L)[:, None] * stride + jnp.arange(k)[None, :]
        patches = x[:, :, idx]                                # (B, C, L, k)
        patches = jnp.transpose(patches, (0, 2, 1, 3)).reshape(B * L, C * k)
        out = jnp.maximum(patches @ w.reshape(C_out, C * k).T + b, 0.0)
        return jnp.transpose(out.reshape(B, L, C_out), (0, 2, 1))

    h1 = conv1d_relu(X, params["conv1_w"], params["conv1_b"], 2)
    enc = conv1d_relu(h1, params["conv2_w"], params["conv2_b"], 2)
    B = X.shape[0]
    H = params["gru_w_hh"].shape[0]
    x_tm = jnp.transpose(enc, (2, 0, 1))                      # (T, B, C)

    def step(h, x_t):
        gi = x_t @ params["gru_w_ih"] + params["gru_b_ih"]
        gh = h @ params["gru_w_hh"] + params["gru_b_hh"]
        r = jax.nn.sigmoid(gi[:, :H] + gh[:, :H])
        z = jax.nn.sigmoid(gi[:, H:2 * H] + gh[:, H:2 * H])
        n = jnp.tanh(gi[:, 2 * H:] + r * gh[:, 2 * H:])
        h_new = (1.0 - z) * n + z * h
        return h_new, h_new

    h_last, _ = jax.lax.scan(step, jnp.zeros((B, H), jnp.float32), x_tm)
    enc_mean = jnp.mean(jnp.transpose(enc, (0, 2, 1)), axis=1)
    return enc_mean @ params["ds_w_enc"] + h_last @ params["ds_w_ctx"] + params["ds_b"]


if __name__ == "__main__":
    key = jax.random.PRNGKey(0)
    pkey, xkey = jax.random.split(key)

    params = init_params(pkey)
    # X: (batch=2, channels=4, time=64) NCW like PyTorch Conv1d input.
    X = jax.random.normal(xkey, (2, 4, 64), dtype=jnp.float32)

    ref = jax.block_until_ready(_reference_forward(params, X))

    # f32 MXU path: exact check of the fused/relayout'd kernel vs. reference.
    model_f32 = CPCCombinedPallas(params, freeze_cpc=True, mxu_dtype=jnp.float32)
    out_f32 = jax.block_until_ready(model_f32(X))
    assert out_f32.shape == (2, 8), out_f32.shape
    assert jnp.allclose(out_f32, ref, atol=1e-3, rtol=1e-3), (
        float(jnp.max(jnp.abs(out_f32 - ref))))

    # bf16 MXU path (default perf configuration): f32 accumulation, looser tol.
    model = CPCCombinedPallas(params, freeze_cpc=True)
    logits = jax.block_until_ready(model(X))
    assert logits.shape == (2, 8), logits.shape
    assert bool(jnp.all(jnp.isfinite(logits)))
    assert jnp.allclose(logits, ref, atol=2e-2, rtol=2e-2), (
        float(jnp.max(jnp.abs(logits - ref))))

    print("KERNEL_OK")
</pallas_src>

<mosaic_0001>
module attributes {stable_mosaic.version = 11 : i64} {
  func.func @_cpc_fused_kernel(%arg0: i32, %arg1: memref<1x112x64xf32, #tpu.memory_space<vmem>>, %arg2: memref<8x112xf32, #tpu.memory_space<vmem>>, %arg3: memref<64x512xf32, #tpu.memory_space<vmem>>, %arg4: memref<1x512xf32, #tpu.memory_space<vmem>>, %arg5: memref<512x128xf32, #tpu.memory_space<vmem>>, %arg6: memref<1x128xf32, #tpu.memory_space<vmem>>, %arg7: memref<128x128xf32, #tpu.memory_space<vmem>>, %arg8: memref<1x128xf32, #tpu.memory_space<vmem>>, %arg9: memref<32x128xf32, #tpu.memory_space<vmem>>, %arg10: memref<1x128xf32, #tpu.memory_space<vmem>>, %arg11: memref<128x128xf32, #tpu.memory_space<vmem>>, %arg12: memref<32x128xf32, #tpu.memory_space<vmem>>, %arg13: memref<1x128xf32, #tpu.memory_space<vmem>>, %arg14: memref<1x8x128xf32, #tpu.memory_space<vmem>>, %arg15: memref<14x8x128xf32, #tpu.memory_space<vmem>>) attributes {dimension_semantics = [#tpu.dimension_semantics<parallel>], iteration_bounds = array<i64: 1>, scalar_prefetch = 0 : i64, scratch_operands = 1 : i64, tpu.core_type = #tpu.core_type<tc>, window_params = [{transform_indices = @transform_0, window_bounds = array<i64: 1, 112, 64>}, {pipeline_mode = #tpu.pipeline_mode<synchronous>, transform_indices = @transform_1, window_bounds = array<i64: 8, 112>}, {pipeline_mode = #tpu.pipeline_mode<synchronous>, transform_indices = @transform_2, window_bounds = array<i64: 64, 512>}, {pipeline_mode = #tpu.pipeline_mode<synchronous>, transform_indices = @transform_3, window_bounds = array<i64: 1, 512>}, {pipeline_mode = #tpu.pipeline_mode<synchronous>, transform_indices = @transform_4, window_bounds = array<i64: 512, 128>}, {pipeline_mode = #tpu.pipeline_mode<synchronous>, transform_indices = @transform_5, window_bounds = array<i64: 1, 128>}, {pipeline_mode = #tpu.pipeline_mode<synchronous>, transform_indices = @transform_6, window_bounds = array<i64: 128, 128>}, {pipeline_mode = #tpu.pipeline_mode<synchronous>, transform_indices = @transform_7, window_bounds = array<i64: 1, 128>}, {pipeline_mode = #tpu.pipeline_mode<synchronous>, transform_indices = @transform_8, window_bounds = array<i64: 32, 128>}, {pipeline_mode = #tpu.pipeline_mode<synchronous>, transform_indices = @transform_9, window_bounds = array<i64: 1, 128>}, {pipeline_mode = #tpu.pipeline_mode<synchronous>, transform_indices = @transform_10, window_bounds = array<i64: 128, 128>}, {pipeline_mode = #tpu.pipeline_mode<synchronous>, transform_indices = @transform_11, window_bounds = array<i64: 32, 128>}, {pipeline_mode = #tpu.pipeline_mode<synchronous>, transform_indices = @transform_12, window_bounds = array<i64: 1, 128>}, {transform_indices = @transform_13, window_bounds = array<i64: 1, 8, 128>}]} {
    %c0 = arith.constant 0 : index
    %c0_0 = arith.constant 0 : index
    %c0_1 = arith.constant 0 : index
    %0 = vector.load %arg1[%c0, %c0_0, %c0_1] : memref<1x112x64xf32, #tpu.memory_space<vmem>>, vector<1x112x64xf32>
    %1 = vector.shape_cast %0 : vector<1x112x64xf32> to vector<112x64xf32>
    %c0_2 = arith.constant 0 : index
    %c0_3 = arith.constant 0 : index
    %2 = vector.load %arg3[%c0_2, %c0_3] : memref<64x512xf32, #tpu.memory_space<vmem>>, vector<64x512xf32>
    %cst = arith.constant dense<0.000000e+00> : vector<112x512xf32>
    %3 = tpu.matmul %1, %2, %cst {dimension_numbers = #tpu.dot_dimension_numbers<[1], [0], [0], [1], [0, 0, 1, 1], [], []>} : vector<112x64xf32>, vector<64x512xf32>, vector<112x512xf32> -> vector<112x512xf32>
    %c0_4 = arith.constant 0 : index
    %c0_5 = arith.constant 0 : index
    %4 = vector.load %arg4[%c0_4, %c0_5] : memref<1x512xf32, #tpu.memory_space<vmem>>, vector<1x512xf32>
    %5 = vector.broadcast %4 : vector<1x512xf32> to vector<112x512xf32>
    %6 = arith.addf %3, %5 : vector<112x512xf32>
    %cst_6 = arith.constant 0.000000e+00 : f32
    %7 = vector.broadcast %cst_6 : f32 to vector<112x512xf32>
    %8 = arith.maximumf %6, %7 : vector<112x512xf32>
    %c0_7 = arith.constant 0 : index
    %c0_8 = arith.constant 0 : index
    %9 = vector.load %arg5[%c0_7, %c0_8] : memref<512x128xf32, #tpu.memory_space<vmem>>, vector<512x128xf32>
    %cst_9 = arith.constant dense<0.000000e+00> : vector<112x128xf32>
    %10 = tpu.matmul %8, %9, %cst_9 {dimension_numbers = #tpu.dot_dimension_numbers<[1], [0], [0], [1], [0, 0, 1, 1], [], []>} : vector<112x512xf32>, vector<512x128xf32>, vector<112x128xf32> -> vector<112x128xf32>
    %c0_10 = arith.constant 0 : index
    %c0_11 = arith.constant 0 : index
    %11 = vector.load %arg6[%c0_10, %c0_11] : memref<1x128xf32, #tpu.memory_space<vmem>>, vector<1x128xf32>
    %12 = vector.broadcast %11 : vector<1x128xf32> to vector<112x128xf32>
    %13 = arith.addf %10, %12 : vector<112x128xf32>
    %cst_12 = arith.constant 0.000000e+00 : f32
    %14 = vector.broadcast %cst_12 : f32 to vector<112x128xf32>
    %15 = arith.maximumf %13, %14 : vector<112x128xf32>
    %c0_13 = arith.constant 0 : index
    %c0_14 = arith.constant 0 : index
    %16 = vector.load %arg7[%c0_13, %c0_14] : memref<128x128xf32, #tpu.memory_space<vmem>>, vector<128x128xf32>
    %cst_15 = arith.constant dense<0.000000e+00> : vector<112x128xf32>
    %17 = tpu.matmul %15, %16, %cst_15 {dimension_numbers = #tpu.dot_dimension_numbers<[1], [0], [0], [1], [0, 0, 1, 1], [], []>} : vector<112x128xf32>, vector<128x128xf32>, vector<112x128xf32> -> vector<112x128xf32>
    %c0_16 = arith.constant 0 : index
    %c0_17 = arith.constant 0 : index
    %18 = vector.load %arg8[%c0_16, %c0_17] : memref<1x128xf32, #tpu.memory_space<vmem>>, vector<1x128xf32>
    %19 = vector.broadcast %18 : vector<1x128xf32> to vector<112x128xf32>
    %20 = arith.addf %17, %19 : vector<112x128xf32>
    %21 = vector.shape_cast %20 : vector<112x128xf32> to vector<14x8x128xf32>
    %c0_18 = arith.constant 0 : index
    %c0_19 = arith.constant 0 : index
    %c0_20 = arith.constant 0 : index
    %22 = vector.load %arg15[%c0_18, %c0_19, %c0_20] : memref<14x8x128xf32, #tpu.memory_space<vmem>>, vector<14x8x128xf32>
    tpu.vector_store %arg15[%c0_18, %c0_19, %c0_20], %21 {strides = array<i32>} : memref<14x8x128xf32, #tpu.memory_space<vmem>>, vector<14x8x128xf32>,
    %c0_21 = arith.constant 0 : index
    %c0_22 = arith.constant 0 : index
    %23 = vector.load %arg2[%c0_21, %c0_22] : memref<8x112xf32, #tpu.memory_space<vmem>>, vector<8x112xf32>
    %cst_23 = arith.constant dense<0.000000e+00> : vector<8x128xf32>
    %24 = tpu.matmul %23, %15, %cst_23 {dimension_numbers = #tpu.dot_dimension_numbers<[1], [0], [0], [1], [0, 0, 1, 1], [], []>} : vector<8x112xf32>, vector<112x128xf32>, vector<8x128xf32> -> vector<8x128xf32>
    %cst_24 = arith.constant 0.0714285746 : f32
    %25 = vector.broadcast %cst_24 : f32 to vector<8x128xf32>
    %26 = arith.mulf %24, %25 : vector<8x128xf32>
    %c0_25 = arith.constant 0 : index
    %c0_26 = arith.constant 0 : index
    %27 = vector.load %arg9[%c0_25, %c0_26] : memref<32x128xf32, #tpu.memory_space<vmem>>, vector<32x128xf32>
    %c0_27 = arith.constant 0 : index
    %c0_28 = arith.constant 0 : index
    %28 = vector.load %arg10[%c0_27, %c0_28] : memref<1x128xf32, #tpu.memory_space<vmem>>, vector<1x128xf32>
    %cst_29 = arith.constant 0.000000e+00 : f32
    %29 = vector.broadcast %cst_29 : f32 to vector<8x32xf32>
    %c0_i32 = arith.constant 0 : i32
    %c14_i32 = arith.constant 14 : i32
    %30 = arith.addi %c0_i32, %c14_i32 : i32
    %c1_i32 = arith.constant 1 : i32
    %31 = scf.for %arg16 = %c0_i32 to %30 step %c1_i32 iter_args(%arg17 = %29) -> (vector<8x32xf32>)  : i32 {
      %43 = arith.index_cast %arg16 : i32 to index
      %c0_42 = arith.constant 0 : index
      %c0_43 = arith.constant 0 : index
      %44 = vector.load %arg15[%43, %c0_42, %c0_43] : memref<14x8x128xf32, #tpu.memory_space<vmem>>, vector<1x8x128xf32>
      %45 = vector.shape_cast %44 : vector<1x8x128xf32> to vector<8x128xf32>
      %cst_44 = arith.constant dense<0.000000e+00> : vector<8x128xf32>
      %46 = tpu.matmul %arg17, %27, %cst_44 {dimension_numbers = #tpu.dot_dimension_numbers<[1], [0], [0], [1], [0, 0, 1, 1], [], []>} : vector<8x32xf32>, vector<32x128xf32>, vector<8x128xf32> -> vector<8x128xf32>
      %47 = vector.broadcast %28 : vector<1x128xf32> to vector<8x128xf32>
      %48 = arith.addf %46, %47 : vector<8x128xf32>
      %49 = vector.extract_strided_slice %45 {offsets = [0, 0], sizes = [8, 32], strides = [1, 1]} : vector<8x128xf32> to vector<8x32xf32>
      %50 = vector.extract_strided_slice %48 {offsets = [0, 0], sizes = [8, 32], strides = [1, 1]} : vector<8x128xf32> to vector<8x32xf32>
      %51 = arith.addf %49, %50 : vector<8x32xf32>
      %52 = arith.negf %51 : vector<8x32xf32>
      %53 = math.exp %52 : vector<8x32xf32>
      %cst_45 = arith.constant 1.000000e+00 : f32
      %54 = vector.broadcast %cst_45 : f32 to vector<8x32xf32>
      %55 = arith.addf %54, %53 : vector<8x32xf32>
      %56 = arith.divf %54, %55 : vector<8x32xf32>
      %57 = vector.extract_strided_slice %45 {offsets = [0, 32], sizes = [8, 32], strides = [1, 1]} : vector<8x128xf32> to vector<8x32xf32>
      %58 = vector.extract_strided_slice %48 {offsets = [0, 32], sizes = [8, 32], strides = [1, 1]} : vector<8x128xf32> to vector<8x32xf32>
      %59 = arith.addf %57, %58 : vector<8x32xf32>
      %60 = arith.negf %59 : vector<8x32xf32>
      %61 = math.exp %60 : vector<8x32xf32>
      %cst_46 = arith.constant 1.000000e+00 : f32
      %62 = vector.broadcast %cst_46 : f32 to vector<8x32xf32>
      %63 = arith.addf %62, %61 : vector<8x32xf32>
      %64 = arith.divf %62, %63 : vector<8x32xf32>
      %65 = vector.extract_strided_slice %45 {offsets = [0, 64], sizes = [8, 32], strides = [1, 1]} : vector<8x128xf32> to vector<8x32xf32>
      %66 = vector.extract_strided_slice %48 {offsets = [0, 64], sizes = [8, 32], strides = [1, 1]} : vector<8x128xf32> to vector<8x32xf32>
      %67 = arith.mulf %56, %66 : vector<8x32xf32>
      %68 = arith.addf %65, %67 : vector<8x32xf32>
      %69 = math.tanh %68 : vector<8x32xf32>
      %cst_47 = arith.constant 1.000000e+00 : f32
      %70 = vector.broadcast %cst_47 : f32 to vector<8x32xf32>
      %71 = arith.subf %70, %64 : vector<8x32xf32>
      %72 = arith.mulf %71, %69 : vector<8x32xf32>
      %73 = arith.mulf %64, %arg17 : vector<8x32xf32>
      %74 = arith.addf %72, %73 : vector<8x32xf32>
      scf.yield %74 : vector<8x32xf32>
    }
    %c14_i32_30 = arith.constant 14 : i32
    %c0_31 = arith.constant 0 : index
    %c0_32 = arith.constant 0 : index
    %32 = vector.load %arg11[%c0_31, %c0_32] : memref<128x128xf32, #tpu.memory_space<vmem>>, vector<128x128xf32>
    %cst_33 = arith.constant dense<0.000000e+00> : vector<8x128xf32>
    %33 = tpu.matmul %26, %32, %cst_33 {dimension_numbers = #tpu.dot_dimension_numbers<[1], [0], [0], [1], [0, 0, 1, 1], [], []>} : vector<8x128xf32>, vector<128x128xf32>, vector<8x128xf32> -> vector<8x128xf32>
    %c0_34 = arith.constant 0 : index
    %c0_35 = arith.constant 0 : index
    %34 = vector.load %arg12[%c0_34, %c0_35] : memref<32x128xf32, #tpu.memory_space<vmem>>, vector<32x128xf32>
    %cst_36 = arith.constant dense<0.000000e+00> : vector<8x128xf32>
    %35 = tpu.matmul %31, %34, %cst_36 {dimension_numbers = #tpu.dot_dimension_numbers<[1], [0], [0], [1], [0, 0, 1, 1], [], []>} : vector<8x32xf32>, vector<32x128xf32>, vector<8x128xf32> -> vector<8x128xf32>
    %36 = arith.addf %33, %35 : vector<8x128xf32>
    %c0_37 = arith.constant 0 : index
    %c0_38 = arith.constant 0 : index
    %37 = vector.load %arg13[%c0_37, %c0_38] : memref<1x128xf32, #tpu.memory_space<vmem>>, vector<1x128xf32>
    %38 = vector.broadcast %37 : vector<1x128xf32> to vector<8x128xf32>
    %39 = arith.addf %36, %38 : vector<8x128xf32>
    %c0_39 = arith.constant 0 : index
    %c0_40 = arith.constant 0 : index
    %c0_41 = arith.constant 0 : index
    %40 = vector.load %arg14[%c0_39, %c0_40, %c0_41] : memref<1x8x128xf32, #tpu.memory_space<vmem>>, vector<1x8x128xf32>
    %41 = vector.shape_cast %40 : vector<1x8x128xf32> to vector<8x128xf32>
    %42 = vector.shape_cast %39 : vector<8x128xf32> to vector<1x8x128xf32>
    tpu.vector_store %arg14[%c0_39, %c0_40, %c0_41], %42 {strides = array<i32>} : memref<1x8x128xf32, #tpu.memory_space<vmem>>, vector<1x8x128xf32>,
    return
  }
  func.func @transform_0(%arg0: i32) -> (i32, i32, i32) {
    %c0_i32 = arith.constant 0 : i32
    %c0_i32_0 = arith.constant 0 : i32
    %c0_i32_1 = arith.constant 0 : i32
    return %arg0, %c0_i32, %c0_i32_0 : i32, i32, i32
  }
  func.func @transform_1(%arg0: i32) -> (i32, i32) {
    %c0_i32 = arith.constant 0 : i32
    %c0_i32_0 = arith.constant 0 : i32
    %c0_i32_1 = arith.constant 0 : i32
    return %c0_i32, %c0_i32_0 : i32, i32
  }
  func.func @transform_2(%arg0: i32) -> (i32, i32) {
    %c0_i32 = arith.constant 0 : i32
    %c0_i32_0 = arith.constant 0 : i32
    %c0_i32_1 = arith.constant 0 : i32
    return %c0_i32, %c0_i32_0 : i32, i32
  }
  func.func @transform_3(%arg0: i32) -> (i32, i32) {
    %c0_i32 = arith.constant 0 : i32
    %c0_i32_0 = arith.constant 0 : i32
    %c0_i32_1 = arith.constant 0 : i32
    return %c0_i32, %c0_i32_0 : i32, i32
  }
  func.func @transform_4(%arg0: i32) -> (i32, i32) {
    %c0_i32 = arith.constant 0 : i32
    %c0_i32_0 = arith.constant 0 : i32
    %c0_i32_1 = arith.constant 0 : i32
    return %c0_i32, %c0_i32_0 : i32, i32
  }
  func.func @transform_5(%arg0: i32) -> (i32, i32) {
    %c0_i32 = arith.constant 0 : i32
    %c0_i32_0 = arith.constant 0 : i32
    %c0_i32_1 = arith.constant 0 : i32
    return %c0_i32, %c0_i32_0 : i32, i32
  }
  func.func @transform_6(%arg0: i32) -> (i32, i32) {
    %c0_i32 = arith.constant 0 : i32
    %c0_i32_0 = arith.constant 0 : i32
    %c0_i32_1 = arith.constant 0 : i32
    return %c0_i32, %c0_i32_0 : i32, i32
  }
  func.func @transform_7(%arg0: i32) -> (i32, i32) {
    %c0_i32 = arith.constant 0 : i32
    %c0_i32_0 = arith.constant 0 : i32
    %c0_i32_1 = arith.constant 0 : i32
    return %c0_i32, %c0_i32_0 : i32, i32
  }
  func.func @transform_8(%arg0: i32) -> (i32, i32) {
    %c0_i32 = arith.constant 0 : i32
    %c0_i32_0 = arith.constant 0 : i32
    %c0_i32_1 = arith.constant 0 : i32
    return %c0_i32, %c0_i32_0 : i32, i32
  }
  func.func @transform_9(%arg0: i32) -> (i32, i32) {
    %c0_i32 = arith.constant 0 : i32
    %c0_i32_0 = arith.constant 0 : i32
    %c0_i32_1 = arith.constant 0 : i32
    return %c0_i32, %c0_i32_0 : i32, i32
  }
  func.func @transform_10(%arg0: i32) -> (i32, i32) {
    %c0_i32 = arith.constant 0 : i32
    %c0_i32_0 = arith.constant 0 : i32
    %c0_i32_1 = arith.constant 0 : i32
    return %c0_i32, %c0_i32_0 : i32, i32
  }
  func.func @transform_11(%arg0: i32) -> (i32, i32) {
    %c0_i32 = arith.constant 0 : i32
    %c0_i32_0 = arith.constant 0 : i32
    %c0_i32_1 = arith.constant 0 : i32
    return %c0_i32, %c0_i32_0 : i32, i32
  }
  func.func @transform_12(%arg0: i32) -> (i32, i32) {
    %c0_i32 = arith.constant 0 : i32
    %c0_i32_0 = arith.constant 0 : i32
    %c0_i32_1 = arith.constant 0 : i32
    return %c0_i32, %c0_i32_0 : i32, i32
  }
  func.func @transform_13(%arg0: i32) -> (i32, i32, i32) {
    %c0_i32 = arith.constant 0 : i32
    %c0_i32_0 = arith.constant 0 : i32
    %c0_i32_1 = arith.constant 0 : i32
    return %arg0, %c0_i32, %c0_i32_0 : i32, i32, i32
  }
}

</mosaic_0001>

<bundles_post_ra>
// kernel: tpu_custom_call.1
= control target key start
LH: loop header
LB: loop body
LE: loop exit
PB: predicated region body
PF: predicated region fallthrough
CT: control target
= control target key end

     0   :  { %18 = vsyncpa [#allocation4], 0  ;;  %s1918_s0 = inlined_call_operand.vmem [shape: f32[1,112,64], index: 0, kind: input, shape index: {}]   ;;  %s1919_s1 = inlined_call_operand.vmem [shape: f32[8,112], index: 1, kind: input, shape index: {}]   ;;  %s1920_s2 = inlined_call_operand.hbm [shape: f32[64,512], index: 2, kind: input, shape index: {}]   ;;  %s1921_s3 = inlined_call_operand.vmem [shape: f32[1,512], index: 3, kind: input, shape index: {}]   ;;  %s1922_s4 = inlined_call_operand.hbm [shape: f32[512,128], index: 4, kind: input, shape index: {}]   ;;  %s1923_s5 = inlined_call_operand.vmem [shape: f32[1,128], index: 5, kind: input, shape index: {}]   ;;  %s1924_s6 = inlined_call_operand.vmem [shape: f32[128,128], index: 6, kind: input, shape index: {}]   ;;  %s1925_s7 = inlined_call_operand.vmem [shape: f32[1,128], index: 7, kind: input, shape index: {}]   ;;  %s1926_s8 = inlined_call_operand.vmem [shape: f32[32,128], index: 8, kind: input, shape index: {}]   ;;  %s1927_s9 = inlined_call_operand.vmem [shape: f32[1,128], index: 9, kind: input, shape index: {}]   ;;  %s1928_s10 = inlined_call_operand.hbm [shape: f32[128,128], index: 10, kind: input, shape index: {}]   ;;  %s1929_s11 = inlined_call_operand.hbm [shape: f32[32,128], index: 11, kind: input, shape index: {}]   ;;  %s1930_s12 = inlined_call_operand.vmem [shape: f32[1,128], index: 12, kind: input, shape index: {}]   ;;  %s1931_s13 = inlined_call_operand.hbm [shape: f32[1,8,128], index: 13, kind: output, shape index: {}]  }
   0x1   :  { %19 = vsyncpa [#allocation7], 0 }
   0x2   :  { %20 = vsyncpa [#allocation10], 0  ;;  %s45_s27 = sshll.u32 %s1922_s4, 4  ;;  %s46_s27 = int_to_ptr.hbm [resolvable:$true] %s45_s27 }
   0x3   :  { %21 = vsyncpa [#allocation5], 0  ;;  %s1386_s28 = smov [#allocation6]   ;;  %s30_s15 = sshll.u32 %s1920_s2, 4  ;;  %s31_s15 = int_to_ptr.hbm [resolvable:$true] %s30_s15 }
   0x4   :  { %s47_s29 = sshll.u32 %s1386_s28, 4  ;;  %s1387_s16 = smov 128   ;;  %s48_s29 = int_to_ptr.vmem [resolvable:$true] %s47_s29 }
   0x5   :  { %s1388_s17 = smov 8   ;;  %s1389_s18 = smov [#allocation3]  }
   0x6   :  { %53 = dma.hbm_to_vmem [thread:$0]  %s46_s27, 8192, %s48_s29, [#allocation7], %s1387_s16, %s1387_s16, %s1388_s17  }
   0x7   :  { %s32_s19 = sshll.u32 %s1389_s18, 4  ;;  %s1390_s20 = smov 512   ;;  %s33_s19 = int_to_ptr.vmem [resolvable:$true] %s32_s19 }
   0x8   :  { %s1391_s21 = smov 32   ;;  %s68_s23 = sshll.u32 %s1928_s10, 4  ;;  %s69_s23 = int_to_ptr.hbm [resolvable:$true] %s68_s23 }
   0x9   :  { %38 = dma.hbm_to_vmem [thread:$0]  %s31_s15, 4096, %s33_s19, [#allocation4], %s1390_s20, %s1390_s20, %s1391_s21  }
   0xa   :  { %s1392_s24 = smov [#allocation8]   ;;  %s81_s28 = sshll.u32 %s1929_s11, 4  ;;  %s82_s28 = int_to_ptr.hbm [resolvable:$true] %s81_s28 }
   0xb   :  { %s70_s25 = sshll.u32 %s1392_s24, 4  ;;  %s1393_s27 = smov [#allocation9]   ;;  %s71_s25 = int_to_ptr.vmem [resolvable:$true] %s70_s25 }
   0xc   :  { %76 = dma.hbm_to_vmem [thread:$0]  %s69_s23, 2048, %s71_s25, [#allocation7], %s1387_s16, %s1387_s16, %s1388_s17  }
   0xd   :  { %s83_s29 = sshll.u32 %s1393_s27, 4  ;;  %s84_s29 = int_to_ptr.vmem [resolvable:$true] %s83_s29 }
   0xe   :  { %89 = dma.hbm_to_vmem [thread:$0]  %s82_s28, 512, %s84_s29, [#allocation10], %s1387_s16, %s1387_s16, %s1388_s17  }
   0xf   :  { %1370 = dma.done.wait [#allocation4], 4096  }
  0x10   :  { %1371 = vsyncadd [#allocation4], 4294963200 }
  0x11   :  { %1372 = dma.done.wait [#allocation7], 10240  }
  0x12   :  { %1373 = vsyncadd [#allocation7], 4294957056 }
  0x13   :  { %1374 = dma.done.wait [#allocation10], 512  }
  0x14   :  { %1375 = vsyncadd [#allocation10], 4294966784  ;;  %v1483_v0 = vld [vmem:[%s1926_s8] sm:$0xff]  ;;  %v1488_v1 = vld [vmem:[%s1926_s8 + $0x8] sm:$0xff]  ;;  %vm164_vm0 = vcmask 523264   ;;  %vm911_vm1 = vcmask 916480  }
  0x15   :  { %v1493_v2 = vld [vmem:[%s1926_s8 + $0x10] sm:$0xff]  ;;  %v1498_v3 = vld [vmem:[%s1926_s8 + $0x18] sm:$0xff]  ;;  %v1503_v4 = vld [vmem:[%s1927_s9] sm:$0x1] }
  0x16   :  { %v150_v5 = vld [vmem:[#allocation3 + $0xe0] sm:$0xff]  ;;  %v1508_v13 = vld [vmem:[%s1918_s0] sm:$0xff]  ;;  %v151_v16 = vld [vmem:[#allocation3 + $0xe8] sm:$0xff] }
  0x17   :  { %215 = vmatpush.msra.mxu0 %v150_v5  ;;  %1181 = vmatpush.msra.mxu1 %v150_v5  ;;  %v146_v6 = vld [vmem:[#allocation3 + $0xc0] sm:$0xff]  ;;  %v1513_v14 = vld [vmem:[%s1918_s0 + $0x20] sm:$0xff]  ;;  %v147_v19 = vld [vmem:[#allocation3 + $0xc8] sm:$0xff] }
  0x18   :  { %1182 = vmatpush.msra.mxu2 %v150_v5  ;;  %1183 = vmatpush.msra.mxu3 %v150_v5  ;;  %v142_v7 = vld [vmem:[#allocation3 + $0xa0] sm:$0xff]  ;;  %v152_v18 = vld [vmem:[#allocation3 + $0xf0] sm:$0xff]  ;;  %v153_v20 = vld [vmem:[#allocation3 + $0xf8] sm:$0xff] }
  0x19   :  { %216 = vmatpush.msra.mxu0 %v146_v6  ;;  %1184 = vmatpush.msra.mxu1 %v146_v6  ;;  %v138_v8 = vld [vmem:[#allocation3 + $0x80] sm:$0xff]  ;;  %v148_v21 = vld [vmem:[#allocation3 + $0xd0] sm:$0xff]  ;;  %v143_v22 = vld [vmem:[#allocation3 + $0xa8] sm:$0xff] }
  0x1a   :  { %1185 = vmatpush.msra.mxu2 %v146_v6  ;;  %1186 = vmatpush.msra.mxu3 %v146_v6  ;;  %v134_v9 = vld [vmem:[#allocation3 + $0x60] sm:$0xff]  ;;  %v149_v23 = vld [vmem:[#allocation3 + $0xd8] sm:$0xff]  ;;  %v144_v24 = vld [vmem:[#allocation3 + $0xb0] sm:$0xff] }
  0x1b   :  { %217 = vmatpush.msra.mxu0 %v142_v7  ;;  %1187 = vmatpush.msra.mxu1 %v142_v7  ;;  %v130_v10 = vld [vmem:[#allocation3 + $0x40] sm:$0xff]  ;;  %v139_v25 = vld [vmem:[#allocation3 + $0x88] sm:$0xff]  ;;  %v109_v26 = vld [vmem:[%s1918_s0 + $0x8] sm:$0xff] }
  0x1c   :  { %1188 = vmatpush.msra.mxu2 %v142_v7  ;;  %1189 = vmatpush.msra.mxu3 %v142_v7  ;;  %v126_v11 = vld [vmem:[#allocation3 + $0x20] sm:$0xff]  ;;  %v1539_v27 = vld [vmem:[%s1918_s0 + $0x28] sm:$0xff]  ;;  %v1544_v28 = vld [vmem:[%s1918_s0 + $0x38] sm:$0xff] }
  0x1d   :  { %218 = vmatpush.msra.mxu0 %v138_v8  ;;  %1190 = vmatpush.msra.mxu1 %v138_v8  ;;  %v122_v12 = vld [vmem:[#allocation3] sm:$0xff]  ;;  %v135_v29 = vld [vmem:[#allocation3 + $0x68] sm:$0xff]  ;;  %v140_v30 = vld [vmem:[#allocation3 + $0x90] sm:$0xff] }
  0x1e   :  { %1191 = vmatpush.msra.mxu2 %v138_v8  ;;  %1192 = vmatpush.msra.mxu3 %v138_v8  ;;  %v1518_v15 = vld [vmem:[%s1918_s0 + $0x30] sm:$0xff]  ;;  %v1550_v31 = vld [vmem:[%s1918_s0 + $0x58] sm:$0xff]  ;;  %v145_v33 = vld [vmem:[#allocation3 + $0xb8] sm:$0xff] }
  0x1f   :  { %219 = vmatpush.msra.mxu0 %v134_v9  ;;  %1193 = vmatpush.msra.mxu1 %v134_v9  ;;  %v1525_v17 = vld [vmem:[%s1918_s0 + $0x50] sm:$0xff]  ;;  %v131_v32 = vld [vmem:[#allocation3 + $0x48] sm:$0xff]  ;;  %v136_v34 = vld [vmem:[#allocation3 + $0x70] sm:$0xff] }
  0x20   :  { %1194 = vmatpush.msra.mxu2 %v134_v9  ;;  %1195 = vmatpush.msra.mxu3 %v134_v9  ;;  %v127_v35 = vld [vmem:[#allocation3 + $0x28] sm:$0xff]  ;;  %v141_v36 = vld [vmem:[#allocation3 + $0x98] sm:$0xff]  ;;  %v132_v37 = vld [vmem:[#allocation3 + $0x50] sm:$0xff] }
  0x21   :  { %220 = vmatpush.msra.mxu0 %v130_v10  ;;  %1196 = vmatpush.msra.mxu1 %v130_v10  ;;  %v123_v38 = vld [vmem:[#allocation3 + $0x8] sm:$0xff]  ;;  %v110_v39 = vld [vmem:[%s1918_s0 + $0x10] sm:$0xff]  ;;  %v1564_v40 = vld [vmem:[%s1918_s0 + $0x40] sm:$0xff] }
  0x22   :  { %1197 = vmatpush.msra.mxu2 %v130_v10  ;;  %1198 = vmatpush.msra.mxu3 %v130_v10  ;;  %v137_v41 = vld [vmem:[#allocation3 + $0x78] sm:$0xff]  ;;  %v128_v42 = vld [vmem:[#allocation3 + $0x30] sm:$0xff]  ;;  %v111_v47 = vld [vmem:[%s1918_s0 + $0x18] sm:$0xff] }
  0x23   :  { %221 = vmatpush.msra.mxu0 %v126_v11  ;;  %1199 = vmatpush.msra.mxu1 %v126_v11  ;;  %v1570_v43 = vld [vmem:[%s1918_s0 + $0x60] sm:$0xff]  ;;  %v133_v44 = vld [vmem:[#allocation3 + $0x58] sm:$0xff]  ;;  %v512_v53 = vld [vmem:[#allocation6 + $0x68] sm:$0xff] }
  0x24   :  { %1200 = vmatpush.msra.mxu2 %v126_v11  ;;  %1201 = vmatpush.msra.mxu3 %v126_v11  ;;  %v124_v45 = vld [vmem:[#allocation3 + $0x10] sm:$0xff]  ;;  %v129_v46 = vld [vmem:[#allocation3 + $0x38] sm:$0xff]  ;;  %v511_v54 = vld [vmem:[#allocation6 + $0x60] sm:$0xff] }
  0x25   :  { %222 = vmatpush.msra.mxu0 %v122_v12  ;;  %1202 = vmatpush.msra.mxu1 %v122_v12  ;;  %v125_v48 = vld [vmem:[#allocation3 + $0x18] sm:$0xff]  ;;  %v513_v52 = vld [vmem:[#allocation6 + $0x70] sm:$0xff]  ;;  %v508_v57 = vld [vmem:[#allocation6 + $0x48] sm:$0xff] }
  0x26   :  { %1203 = vmatpush.msra.mxu2 %v122_v12  ;;  %1120 = vmatmul.msk.f32.vlgmr.msra.gmra.mxu0 %vm164_vm0, %v1508_v13  ;;  %v1584_v49 = vld [vmem:[%s1918_s0 + $0x48] sm:$0xff]  ;;  %v509_v56 = vld [vmem:[#allocation6 + $0x50] sm:$0xff]  ;;  %v507_v58 = vld [vmem:[#allocation6 + $0x40] sm:$0xff] }
  0x27   :  { %1124 = vmatmul.msk.f32.vlgmr.msra.gmra.mxu1 %vm164_vm0, %v1513_v14  ;;  %1126 = vmatmul.msk.f32.vlgmr.msra.gmra.mxu2 %vm164_vm0, %v1518_v15  ;;  %v1590_v50 = vld [vmem:[%s1918_s0 + $0x68] sm:$0xff]  ;;  %v505_v61 = vld [vmem:[#allocation6 + $0x30] sm:$0xff]  ;;  %v504_v63 = vld [vmem:[#allocation6 + $0x28] sm:$0xff] }
  0x28   :  { %1204 = vmatpush.msra.mxu3 %v122_v12  ;;  %274 = vmatpush.msrb.mxu1 %v151_v16  ;;  %v514_v51 = vld [vmem:[#allocation6 + $0x78] sm:$0xff]  ;;  %v529_v62 = vld [vmem:[#allocation6 + $0xf0] sm:$0xff]  ;;  %v528_v5 = vld [vmem:[#allocation6 + $0xe8] sm:$0xff] }
  0x29   :  { %1130 = vmatmul.msk.f32.vlgmr.msra.gmra.mxu3 %vm164_vm0, %v1525_v17  ;;  %333 = vmatpush.msrb.mxu2 %v152_v18  ;;  %v510_v55 = vld [vmem:[#allocation6 + $0x58] sm:$0xff]  ;;  %v503_v6 = vld [vmem:[#allocation6 + $0x20] sm:$0xff]  ;;  %v501_v10 = vld [vmem:[#allocation6 + $0x10] sm:$0xff] }
  0x2a   :  { %275 = vmatpush.msrb.mxu1 %v147_v19  ;;  %392 = vmatpush.msrb.mxu3 %v153_v20  ;;  %v506_v59 = vld [vmem:[#allocation6 + $0x38] sm:$0xff]  ;;  %v527_v7 = vld [vmem:[#allocation6 + $0xe0] sm:$0xff]  ;;  %v525_v11 = vld [vmem:[#allocation6 + $0xd0] sm:$0xff] }
  0x2b   :  { %334 = vmatpush.msrb.mxu2 %v148_v21  ;;  %567 = vmatpush.msrb.mxu0 %v514_v51  ;;  %v530_v60 = vld [vmem:[#allocation6 + $0xf8] sm:$0xff]  ;;  %v500_v12 = vld [vmem:[#allocation6 + $0x8] sm:$0xff]  ;;  %v521_v18 = vld [vmem:[#allocation6 + $0xb0] sm:$0xff] }
  0x2c   :  { %276 = vmatpush.msrb.mxu1 %v143_v22  ;;  %393 = vmatpush.msrb.mxu3 %v149_v23  ;;  %v502_v8 = vld [vmem:[#allocation6 + $0x18] sm:$0xff]  ;;  %v520_v19 = vld [vmem:[#allocation6 + $0xa8] sm:$0xff]  ;;  %v519_v20 = vld [vmem:[#allocation6 + $0xa0] sm:$0xff] }
  0x2d   :  { %335 = vmatpush.msrb.mxu2 %v144_v24  ;;  %568 = vmatpush.msrb.mxu0 %v513_v52  ;;  %v526_v9 = vld [vmem:[#allocation6 + $0xd8] sm:$0xff]  ;;  %v545_v23 = vld [vmem:[#allocation6 + $0x170] sm:$0xff] }
  0x2e   :  { %277 = vmatpush.msrb.mxu1 %v139_v25  ;;  %1121 = vmatmul.msk.f32.gmra.mxu0 %vm164_vm0, %v109_v26  ;;  %v522_v16 = vld [vmem:[#allocation6 + $0xb8] sm:$0xff]  ;;  %v517_v25 = vld [vmem:[#allocation6 + $0x90] sm:$0xff] }
  0x2f   :  { %1125 = vmatmul.msk.f32.gmra.mxu1 %vm164_vm0, %v1539_v27  ;;  %1127 = vmatmul.msk.f32.gmra.mxu2 %vm164_vm0, %v1544_v28  ;;  %v546_v21 = vld [vmem:[#allocation6 + $0x178] sm:$0xff] }
  0x30   :  { %278 = vmatpush.msrb.mxu1 %v135_v29  ;;  %336 = vmatpush.msrb.mxu2 %v140_v30  ;;  %v518_v22 = vld [vmem:[#allocation6 + $0x98] sm:$0xff]  ;;  %v543_v29 = vld [vmem:[#allocation6 + $0x160] sm:$0xff]  ;;  %v560_v30 = vld [vmem:[#allocation6 + $0x1e8] sm:$0xff] }
  0x31   :  { %1131 = vmatmul.msk.f32.gmra.mxu3 %vm164_vm0, %v1550_v31  ;;  %569 = vmatpush.msrb.mxu0 %v512_v53  ;;  %v562_v24 = vld [vmem:[#allocation6 + $0x1f8] sm:$0xff]  ;;  %v535_v53 = vld [vmem:[#allocation6 + $0x120] sm:$0xff] }
  0x32   :  { %279 = vmatpush.msrb.mxu1 %v131_v32  ;;  %394 = vmatpush.msrb.mxu3 %v145_v33  ;;  %v515_v32 = vld [vmem:[#allocation6 + $0x80] sm:$0xff]  ;;  %v542_v33 = vld [vmem:[#allocation6 + $0x158] sm:$0xff] }
  0x33   :  { %337 = vmatpush.msrb.mxu2 %v136_v34  ;;  %570 = vmatpush.msrb.mxu0 %v511_v54  ;;  %v559_v34 = vld [vmem:[#allocation6 + $0x1e0] sm:$0xff] }
  0x34   :  { %280 = vmatpush.msrb.mxu1 %v127_v35  ;;  %395 = vmatpush.msrb.mxu3 %v141_v36  ;;  %v541_v35 = vld [vmem:[#allocation6 + $0x150] sm:$0xff]  ;;  %v558_v36 = vld [vmem:[#allocation6 + $0x1d8] sm:$0xff] }
  0x35   :  { %338 = vmatpush.msrb.mxu2 %v132_v37  ;;  %571 = vmatpush.msrb.mxu0 %v510_v55  ;;  %v540_v37 = vld [vmem:[#allocation6 + $0x148] sm:$0xff]  ;;  %v534_v55 = vld [vmem:[#allocation6 + $0x118] sm:$0xff] }
  0x36   :  { %281 = vmatpush.msrb.mxu1 %v123_v38  ;;  %1122 = vmatmul.msk.f32.gmra.mxu0 %vm164_vm0, %v110_v39  ;;  %v557_v38 = vld [vmem:[#allocation6 + $0x1d0] sm:$0xff] }
  0x37   :  { %1128 = vmatmul.msk.f32.gmra.mxu2 %vm164_vm0, %v1564_v40  ;;  %1134 = vmatmul.msk.f32.vlgmr.msrb.gmra.mxu1 %vm164_vm0, %v1508_v13 }
  0x38   :  { %396 = vmatpush.msrb.mxu3 %v137_v41  ;;  %339 = vmatpush.msrb.mxu2 %v128_v42  ;;  %v556_v41 = vld [vmem:[#allocation6 + $0x1c8] sm:$0xff]  ;;  %v555_v42 = vld [vmem:[#allocation6 + $0x1c0] sm:$0xff] }
  0x39   :  { %1132 = vmatmul.msk.f32.gmra.mxu3 %vm164_vm0, %v1570_v43  ;;  %572 = vmatpush.msrb.mxu0 %v509_v56  ;;  %v551_v56 = vld [vmem:[#allocation6 + $0x1a0] sm:$0xff] }
  0x3a   :  { %397 = vmatpush.msrb.mxu3 %v133_v44  ;;  %340 = vmatpush.msrb.mxu2 %v124_v45  ;;  %v537_v45 = vld [vmem:[#allocation6 + $0x130] sm:$0xff] }
  0x3b   :  { %573 = vmatpush.msrb.mxu0 %v508_v57  ;;  %626 = vmatpush.msra.mxu1 %v530_v60  ;;  %v533_v57 = vld [vmem:[#allocation6 + $0x110] sm:$0xff]  ;;  %v550_v60 = vld [vmem:[#allocation6 + $0x198] sm:$0xff] }
  0x3c   :  { %398 = vmatpush.msrb.mxu3 %v129_v46  ;;  %685 = vmatpush.msra.mxu2 %v546_v21  ;;  %v554_v46 = vld [vmem:[#allocation6 + $0x1b8] sm:$0xff] }
  0x3d   :  { %574 = vmatpush.msrb.mxu0 %v507_v58  ;;  %627 = vmatpush.msra.mxu1 %v529_v62 }
  0x3e   :  { %1123 = vmatmul.msk.f32.gmra.mxu0 %vm164_vm0, %v111_v47  ;;  %399 = vmatpush.msrb.mxu3 %v125_v48  ;;  %v536_v48 = vld [vmem:[#allocation6 + $0x128] sm:$0xff] }
  0x3f   :  { %1129 = vmatmul.msk.f32.gmra.mxu2 %vm164_vm0, %v1584_v49  ;;  %1135 = vmatmul.msk.f32.gmra.mxu1 %vm164_vm0, %v109_v26 }
  0x40   :  { %575 = vmatpush.msrb.mxu0 %v506_v59  ;;  %628 = vmatpush.msra.mxu1 %v528_v5 }
  0x41   :  { %1133 = vmatmul.msk.f32.gmra.mxu3 %vm164_vm0, %v1590_v50  ;;  %686 = vmatpush.msra.mxu2 %v545_v23 }
  0x42   :  { %576 = vmatpush.msrb.mxu0 %v505_v61  ;;  %629 = vmatpush.msra.mxu1 %v527_v7  ;;  %v532_v61 = vld [vmem:[#allocation6 + $0x108] sm:$0xff] }
  0x43   :  { %744 = vmatpush.msra.mxu3 %v562_v24 }
  0x44   :  { %577 = vmatpush.msrb.mxu0 %v504_v63  ;;  %630 = vmatpush.msra.mxu1 %v526_v9 }
  0x46   :  { %578 = vmatpush.msrb.mxu0 %v503_v6  ;;  %631 = vmatpush.msra.mxu1 %v525_v11  ;;  %v549_v6 = vld [vmem:[#allocation6 + $0x190] sm:$0xff] }
  0x47   :  { %1136 = vmatmul.msk.f32.gmra.mxu1 %vm164_vm0, %v110_v39  ;;  %1148 = vmatmul.msk.f32.vlgmr.msrb.gmra.mxu2 %vm164_vm0, %v1508_v13 }
  0x48   :  { %579 = vmatpush.msrb.mxu0 %v502_v8  ;;  %v548_v8 = vld [vmem:[#allocation6 + $0x188] sm:$0xff] }
  0x49   :  { %1162 = vmatmul.msk.f32.vlgmr.msrb.gmra.mxu3 %vm164_vm0, %v1508_v13  ;;  %v524_v13 = vld [vmem:[#allocation6 + $0xc8] sm:$0xff] }
  0x4a   :  { %580 = vmatpush.msrb.mxu0 %v501_v10  ;;  %632 = vmatpush.msra.mxu1 %v524_v13  ;;  %v547_v10 = vld [vmem:[#allocation6 + $0x180] sm:$0xff] }
  0x4c   :  { %581 = vmatpush.msrb.mxu0 %v500_v12 }
  0x4f   :  { %1137 = vmatmul.msk.f32.gmra.mxu1 %vm164_vm0, %v111_v47  ;;  %1149 = vmatmul.msk.f32.gmra.mxu2 %vm164_vm0, %v109_v26 }
  0x51   :  { %1163 = vmatmul.msk.f32.gmra.mxu3 %vm164_vm0, %v109_v26  ;;  %v544_v26 = vld [vmem:[#allocation6 + $0x168] sm:$0xff] }
  0x52   :  { %687 = vmatpush.msra.mxu2 %v544_v26 }
  0x54   :  { %688 = vmatpush.msra.mxu2 %v543_v29 }
  0x56   :  { %689 = vmatpush.msra.mxu2 %v542_v33 }
  0x57   :  { %1138 = vmatmul.msk.f32.gmra.mxu1 %vm164_vm0, %v1513_v14  ;;  %1150 = vmatmul.msk.f32.gmra.mxu2 %vm164_vm0, %v110_v39 }
  0x58   :  { %690 = vmatpush.msra.mxu2 %v541_v35 }
  0x59   :  { %1164 = vmatmul.msk.f32.gmra.mxu3 %vm164_vm0, %v110_v39  ;;  %v1658_v39 = vld [vmem:[%s1921_s3] sm:$0xf] }
  0x5a   :  { %691 = vmatpush.msra.mxu2 %v540_v37  ;;  %v1665_v44 = vperm.slane %v1658_v39, 0  ;;  %v1684_v9 = vperm.slane %v1658_v39, 1  ;;  %v1705_v35 = vperm.slane %v1658_v39, 2 }
  0x5f   :  { %1139 = vmatmul.msk.f32.gmra.mxu1 %vm164_vm0, %v1539_v27  ;;  %1151 = vmatmul.msk.f32.gmra.mxu2 %vm164_vm0, %v111_v47 }
  0x61   :  { %1165 = vmatmul.msk.f32.gmra.mxu3 %vm164_vm0, %v111_v47 }
  0x67   :  { %1140 = vmatmul.msk.f32.gmra.mxu1 %vm164_vm0, %v1518_v15  ;;  %1152 = vmatmul.msk.f32.gmra.mxu2 %vm164_vm0, %v1513_v14 }
  0x69   :  { %1166 = vmatmul.msk.f32.gmra.mxu3 %vm164_vm0, %v1513_v14  ;;  %v499_v14 = vld [vmem:[#allocation6] sm:$0xff] }
  0x6a   :  { %582 = vmatpush.msrb.mxu0 %v499_v14 }
  0x6f   :  { %1141 = vmatmul.msk.f32.gmra.mxu1 %vm164_vm0, %v1544_v28  ;;  %1153 = vmatmul.msk.f32.gmra.mxu2 %vm164_vm0, %v1539_v27 }
  0x71   :  { %1167 = vmatmul.msk.f32.gmra.mxu3 %vm164_vm0, %v1539_v27  ;;  %v561_v27 = vld [vmem:[#allocation6 + $0x1f0] sm:$0xff] }
  0x72   :  { %745 = vmatpush.msra.mxu3 %v561_v27 }
  0x74   :  { %746 = vmatpush.msra.mxu3 %v560_v30 }
  0x76   :  { %747 = vmatpush.msra.mxu3 %v559_v34 }
  0x77   :  { %1142 = vmatmul.msk.f32.gmra.mxu1 %vm164_vm0, %v1564_v40  ;;  %1154 = vmatmul.msk.f32.gmra.mxu2 %vm164_vm0, %v1518_v15 }
  0x78   :  { %748 = vmatpush.msra.mxu3 %v558_v36  ;;  %v1708_v36 = vperm.slane %v1658_v39, 3 }
  0x79   :  { %1168 = vmatmul.msk.f32.gmra.mxu3 %vm164_vm0, %v1518_v15  ;;  %v523_v15 = vld [vmem:[#allocation6 + $0xc0] sm:$0xff] }
  0x7a   :  { %633 = vmatpush.msra.mxu1 %v523_v15  ;;  %749 = vmatpush.msra.mxu3 %v557_v38 }
  0x7c   :  { %634 = vmatpush.msra.mxu1 %v522_v16  ;;  %750 = vmatpush.msra.mxu3 %v556_v41 }
  0x7e   :  { %635 = vmatpush.msra.mxu1 %v521_v18  ;;  %751 = vmatpush.msra.mxu3 %v555_v42 }
  0x7f   :  { %1143 = vmatmul.msk.f32.gmra.mxu1 %vm164_vm0, %v1584_v49  ;;  %1155 = vmatmul.msk.f32.gmra.mxu2 %vm164_vm0, %v1544_v28 }
  0x80   :  { %636 = vmatpush.msra.mxu1 %v520_v19  ;;  %752 = vmatpush.msra.mxu3 %v554_v46 }
  0x81   :  { %1169 = vmatmul.msk.f32.gmra.mxu3 %vm164_vm0, %v1544_v28  ;;  %v516_v28 = vld [vmem:[#allocation6 + $0x88] sm:$0xff] }
  0x82   :  { %637 = vmatpush.msra.mxu1 %v519_v20 }
  0x84   :  { %638 = vmatpush.msra.mxu1 %v518_v22 }
  0x86   :  { %639 = vmatpush.msra.mxu1 %v517_v25 }
  0x87   :  { %1144 = vmatmul.msk.f32.gmra.mxu1 %vm164_vm0, %v1525_v17  ;;  %1156 = vmatmul.msk.f32.gmra.mxu2 %vm164_vm0, %v1564_v40 }
  0x88   :  { %640 = vmatpush.msra.mxu1 %v516_v28 }
  0x89   :  { %1170 = vmatmul.msk.f32.gmra.mxu3 %vm164_vm0, %v1564_v40  ;;  %v539_v40 = vld [vmem:[#allocation6 + $0x140] sm:$0xff] }
  0x8a   :  { %641 = vmatpush.msra.mxu1 %v515_v32  ;;  %692 = vmatpush.msra.mxu2 %v539_v40 }
  0x8f   :  { %1145 = vmatmul.msk.f32.gmra.mxu1 %vm164_vm0, %v1550_v31  ;;  %1157 = vmatmul.msk.f32.gmra.mxu2 %vm164_vm0, %v1584_v49 }
  0x91   :  { %1171 = vmatmul.msk.f32.gmra.mxu3 %vm164_vm0, %v1584_v49  ;;  %v553_v49 = vld [vmem:[#allocation6 + $0x1b0] sm:$0xff] }
  0x92   :  { %753 = vmatpush.msra.mxu3 %v553_v49 }
  0x97   :  { %1146 = vmatmul.msk.f32.gmra.mxu1 %vm164_vm0, %v1570_v43  ;;  %1158 = vmatmul.msk.f32.gmra.mxu2 %vm164_vm0, %v1525_v17 }
  0x99   :  { %1172 = vmatmul.msk.f32.gmra.mxu3 %vm164_vm0, %v1525_v17  ;;  %v538_v17 = vld [vmem:[#allocation6 + $0x138] sm:$0xff] }
  0x9a   :  { %693 = vmatpush.msra.mxu2 %v538_v17 }
  0x9c   :  { %694 = vmatpush.msra.mxu2 %v537_v45 }
  0x9e   :  { %695 = vmatpush.msra.mxu2 %v536_v48 }
  0x9f   :  { %1147 = vmatmul.msk.f32.gmra.mxu1 %vm164_vm0, %v1590_v50  ;;  %1159 = vmatmul.msk.f32.gmra.mxu2 %vm164_vm0, %v1550_v31 }
  0xa0   :  { %696 = vmatpush.msra.mxu2 %v535_v53 }
  0xa1   :  { %1173 = vmatmul.msk.f32.gmra.mxu3 %vm164_vm0, %v1550_v31  ;;  %v552_v31 = vld [vmem:[#allocation6 + $0x1a8] sm:$0xff] }
  0xa2   :  { %754 = vmatpush.msra.mxu3 %v552_v31  ;;  %697 = vmatpush.msra.mxu2 %v534_v55 }
  0xa3   :  { %v224_v47 = vpop.f32.mrf.mxu0 }
  0xa4   :  { %v225_v51 = vadd.f32 %v224_v47, %v1665_v44  ;;  %v236_v52 = vpop.f32.mrf.mxu1  ;;  %755 = vmatpush.msra.mxu3 %v551_v56  ;;  %698 = vmatpush.msra.mxu2 %v533_v57 }
  0xa5   :  { %v237_v27 = vadd.f32 %v236_v52, %v1665_v44 }
  0xa6   :  { %v443_v54 = vmax.f32 %v225_v51, 0.0  ;;  %756 = vmatpush.msra.mxu3 %v550_v60  ;;  %699 = vmatpush.msra.mxu2 %v532_v61 }
  0xa7   :  { %1160 = vmatmul.msk.f32.gmra.mxu2 %vm164_vm0, %v1570_v43  ;;  %v459_v33 = vmax.f32 %v237_v27, 0.0 }
  0xa8   :  { %583 = vmatmul.f32.vlgmr.msrb.gmra.mxu0 %v443_v54  ;;  %757 = vmatpush.msra.mxu3 %v549_v6 }
  0xa9   :  { %1174 = vmatmul.msk.f32.gmra.mxu3 %vm164_vm0, %v1570_v43  ;;  %v531_v43 = vld [vmem:[#allocation6 + $0x100] sm:$0xff] }
  0xaa   :  { %v1674_v58 = vpop.f32.mrf.mxu2  ;;  %700 = vmatpush.msra.mxu2 %v531_v43  ;;  %758 = vmatpush.msra.mxu3 %v548_v8 }
  0xab   :  { %v227_v59 = vpop.f32.mrf.mxu0  ;;  %v243_v39 = vadd.f32 %v1674_v58, %v1665_v44 }
  0xac   :  { %v228_v62 = vadd.f32 %v227_v59, %v1665_v44  ;;  %v239_v63 = vpop.f32.mrf.mxu1  ;;  %v1677_v5 = vpop.f32.mrf.mxu3  ;;  %759 = vmatpush.msra.mxu3 %v547_v10 }
  0xad   :  { %v240_v37 = vadd.f32 %v239_v63, %v1665_v44  ;;  %v467_v57 = vmax.f32 %v243_v39, 0.0 }
  0xae   :  { %v447_v7 = vmax.f32 %v228_v62, 0.0 }
  0xaf   :  { %1161 = vmatmul.msk.f32.gmra.mxu2 %vm164_vm0, %v1590_v50  ;;  %v463_v47 = vmax.f32 %v240_v37, 0.0 }
  0xb0   :  { %586 = vmatmul.f32.gmra.mxu0 %v447_v7 }
  0xb1   :  { %1175 = vmatmul.msk.f32.gmra.mxu3 %vm164_vm0, %v1590_v50 }
  0xb2   :  { %v1686_v11 = vpop.f32.mrf.mxu2 }
  0xb3   :  { %v230_v12 = vpop.f32.mrf.mxu0  ;;  %v246_v58 = vadd.f32 %v1686_v11, %v1665_v44 }
  0xb4   :  { %v231_v13 = vadd.f32 %v230_v12, %v1665_v44  ;;  %v1689_v14 = vpop.f32.mrf.mxu3  ;;  %v283_v15 = vpop.f32.mrf.mxu1 }
  0xb5   :  { %v284_v16 = vadd.f32 %v283_v15, %v1684_v9  ;;  %v471_v10 = vmax.f32 %v246_v58, 0.0 }
  0xb6   :  { %v451_v18 = vmax.f32 %v231_v13, 0.0 }
  0xb7   :  { %v444_v19 = vmax.f32 %v284_v16, 0.0 }
  0xb8   :  { %589 = vmatmul.f32.gmra.mxu0 %v451_v18 }
  0xb9   :  { %642 = vmatmul.f32.vlgmr.msra.gmra.mxu1 %v444_v19 }
  0xba   :  { %v1692_v50 = vpop.f32.mrf.mxu2 }
  0xbb   :  { %v233_v20 = vpop.f32.mrf.mxu0  ;;  %v249_v11 = vadd.f32 %v1692_v50, %v1665_v44 }
  0xbc   :  { %v234_v21 = vadd.f32 %v233_v20, %v1665_v44  ;;  %v1695_v22 = vpop.f32.mrf.mxu3  ;;  %v286_v23 = vpop.f32.mrf.mxu1 }
  0xbd   :  { %v287_v24 = vadd.f32 %v286_v23, %v1684_v9 }
  0xbe   :  { %v455_v25 = vmax.f32 %v234_v21, 0.0 }
  0xbf   :  { %v448_v26 = vmax.f32 %v287_v24, 0.0  ;;  %v475_v24 = vmax.f32 %v249_v11, 0.0 }
  0xc0   :  { %592 = vmatmul.f32.gmra.mxu0 %v455_v25 }
  0xc1   :  { %645 = vmatmul.f32.gmra.mxu1 %v448_v26 }
  0xc2   :  { %v1699_v28 = vpop.f32.mrf.mxu2 }
  0xc3   :  { %v252_v50 = vadd.f32 %v1699_v28, %v1665_v44  ;;  %v255_v28 = vadd.f32 %v1677_v5, %v1665_v44  ;;  %v258_v5 = vadd.f32 %v1689_v14, %v1665_v44  ;;  %v261_v14 = vadd.f32 %v1695_v22, %v1665_v44 }
  0xc4   :  { %v1701_v29 = vpop.f32.mrf.mxu3  ;;  %v289_v30 = vpop.f32.mrf.mxu1 }
  0xc5   :  { %v290_v32 = vadd.f32 %v289_v30, %v1684_v9  ;;  %v487_v58 = vmax.f32 %v258_v5, 0.0  ;;  %v264_v22 = vadd.f32 %v1701_v29, %v1665_v44 }
  0xc7   :  { %v452_v34 = vmax.f32 %v290_v32, 0.0 }
  0xc8   :  { %595 = vmatmul.f32.gmra.mxu0 %v459_v33 }
  0xc9   :  { %648 = vmatmul.f32.gmra.mxu1 %v452_v34 }
  0xca   :  { %v342_v38 = vpop.f32.mrf.mxu2 }
  0xcb   :  { %v343_v40 = vadd.f32 %v342_v38, %v1705_v35 }
  0xcc   :  { %v292_v41 = vpop.f32.mrf.mxu1  ;;  %v401_v17 = vpop.f32.mrf.mxu3 }
  0xcd   :  { %v445_v42 = vmax.f32 %v343_v40, 0.0  ;;  %v293_v45 = vadd.f32 %v292_v41, %v1684_v9  ;;  %v402_v46 = vadd.f32 %v401_v17, %v1708_v36  ;;  %v479_v40 = vmax.f32 %v252_v50, 0.0 }
  0xcf   :  { %v446_v48 = vmax.f32 %v402_v46, 0.0  ;;  %701 = vmatmul.f32.vlgmr.msra.gmra.mxu2 %v445_v42  ;;  %v456_v49 = vmax.f32 %v293_v45, 0.0 }
  0xd0   :  { %598 = vmatmul.f32.gmra.mxu0 %v463_v47 }
  0xd1   :  { %651 = vmatmul.f32.gmra.mxu1 %v456_v49  ;;  %760 = vmatmul.f32.vlgmr.msra.gmra.mxu3 %v446_v48 }
  0xd2   :  { %v345_v51 = vpop.f32.mrf.mxu2 }
  0xd3   :  { %v346_v52 = vadd.f32 %v345_v51, %v1705_v35  ;;  %v483_v51 = vmax.f32 %v255_v28, 0.0 }
  0xd4   :  { %v295_v53 = vpop.f32.mrf.mxu1  ;;  %v404_v54 = vpop.f32.mrf.mxu3 }
  0xd5   :  { %v296_v31 = vadd.f32 %v295_v53, %v1684_v9  ;;  %v405_v55 = vadd.f32 %v404_v54, %v1708_v36  ;;  %v449_v56 = vmax.f32 %v346_v52, 0.0 }
  0xd7   :  { %704 = vmatmul.f32.gmra.mxu2 %v449_v56  ;;  %v460_v59 = vmax.f32 %v296_v31, 0.0  ;;  %v450_v60 = vmax.f32 %v405_v55, 0.0 }
  0xd8   :  { %601 = vmatmul.f32.gmra.mxu0 %v467_v57 }
  0xd9   :  { %654 = vmatmul.f32.gmra.mxu1 %v460_v59  ;;  %763 = vmatmul.f32.gmra.mxu3 %v450_v60 }
  0xda   :  { %v348_v61 = vpop.f32.mrf.mxu2 }
  0xdb   :  { %v349_v62 = vadd.f32 %v348_v61, %v1705_v35 }
  0xdc   :  { %v298_v63 = vpop.f32.mrf.mxu1  ;;  %v407_v6 = vpop.f32.mrf.mxu3 }
  0xdd   :  { %v299_v7 = vadd.f32 %v298_v63, %v1684_v9  ;;  %v408_v43 = vadd.f32 %v407_v6, %v1708_v36  ;;  %v453_v8 = vmax.f32 %v349_v62, 0.0 }
  0xdf   :  { %v464_v12 = vmax.f32 %v299_v7, 0.0  ;;  %707 = vmatmul.f32.gmra.mxu2 %v453_v8  ;;  %v454_v13 = vmax.f32 %v408_v43, 0.0 }
  0xe0   :  { %604 = vmatmul.f32.gmra.mxu0 %v471_v10 }
  0xe1   :  { %657 = vmatmul.f32.gmra.mxu1 %v464_v12  ;;  %766 = vmatmul.f32.gmra.mxu3 %v454_v13  ;;  %v491_v13 = vmax.f32 %v261_v14, 0.0 }
  0xe2   :  { %v351_v15 = vpop.f32.mrf.mxu2 }
  0xe3   :  { %v352_v16 = vadd.f32 %v351_v15, %v1705_v35 }
  0xe4   :  { %v301_v18 = vpop.f32.mrf.mxu1  ;;  %v410_v19 = vpop.f32.mrf.mxu3 }
  0xe5   :  { %v302_v20 = vadd.f32 %v301_v18, %v1684_v9  ;;  %v411_v21 = vadd.f32 %v410_v19, %v1708_v36  ;;  %v457_v23 = vmax.f32 %v352_v16, 0.0 }
  0xe7   :  { %v468_v25 = vmax.f32 %v302_v20, 0.0  ;;  %710 = vmatmul.f32.gmra.mxu2 %v457_v23  ;;  %v458_v26 = vmax.f32 %v411_v21, 0.0 }
  0xe8   :  { %607 = vmatmul.f32.gmra.mxu0 %v475_v24 }
  0xe9   :  { %660 = vmatmul.f32.gmra.mxu1 %v468_v25  ;;  %769 = vmatmul.f32.gmra.mxu3 %v458_v26  ;;  %v495_v25 = vmax.f32 %v264_v22, 0.0  ;;  %v819_v22 = vld [vmem:[%s1924_s6 + $0x10] sm:$0xff] }
  0xea   :  { %v354_v27 = vpop.f32.mrf.mxu2 }
  0xeb   :  { %v355_v30 = vadd.f32 %v354_v27, %v1705_v35 }
  0xec   :  { %v304_v32 = vpop.f32.mrf.mxu1  ;;  %v413_v33 = vpop.f32.mrf.mxu3 }
  0xed   :  { %v461_v34 = vmax.f32 %v355_v30, 0.0  ;;  %v305_v37 = vadd.f32 %v304_v32, %v1684_v9  ;;  %v414_v38 = vadd.f32 %v413_v33, %v1708_v36 }
  0xef   :  { %v472_v41 = vmax.f32 %v305_v37, 0.0  ;;  %v462_v17 = vmax.f32 %v414_v38, 0.0  ;;  %713 = vmatmul.f32.gmra.mxu2 %v461_v34 }
  0xf0   :  { %610 = vmatmul.f32.gmra.mxu0 %v479_v40  ;;  %v832_v40 = vld [vmem:[%s1924_s6 + $0x78] sm:$0xff] }
  0xf1   :  { %663 = vmatmul.f32.gmra.mxu1 %v472_v41  ;;  %772 = vmatmul.f32.gmra.mxu3 %v462_v17  ;;  %v831_v41 = vld [vmem:[%s1924_s6 + $0x70] sm:$0xff] }
  0xf2   :  { %v357_v42 = vpop.f32.mrf.mxu2  ;;  %837 = vmatpush.msra.mxu0 %v832_v40 }
  0xf3   :  { %v358_v45 = vadd.f32 %v357_v42, %v1705_v35 }
  0xf4   :  { %v307_v46 = vpop.f32.mrf.mxu1  ;;  %v416_v47 = vpop.f32.mrf.mxu3  ;;  %838 = vmatpush.msra.mxu0 %v831_v41 }
  0xf5   :  { %v465_v48 = vmax.f32 %v358_v45, 0.0  ;;  %v308_v49 = vadd.f32 %v307_v46, %v1684_v9  ;;  %v417_v39 = vadd.f32 %v416_v47, %v1708_v36 }
  0xf7   :  { %v476_v52 = vmax.f32 %v308_v49, 0.0  ;;  %v466_v53 = vmax.f32 %v417_v39, 0.0  ;;  %716 = vmatmul.f32.gmra.mxu2 %v465_v48  ;;  %v830_v49 = vld [vmem:[%s1924_s6 + $0x68] sm:$0xff] }
  0xf8   :  { %613 = vmatmul.f32.gmra.mxu0 %v483_v51 }
  0xf9   :  { %666 = vmatmul.f32.gmra.mxu1 %v476_v52  ;;  %775 = vmatmul.f32.gmra.mxu3 %v466_v53  ;;  %v829_v52 = vld [vmem:[%s1924_s6 + $0x60] sm:$0xff]  ;;  %v828_v53 = vld [vmem:[%s1924_s6 + $0x58] sm:$0xff] }
  0xfa   :  { %v360_v54 = vpop.f32.mrf.mxu2  ;;  %839 = vmatpush.msra.mxu0 %v830_v49 }
  0xfb   :  { %v361_v31 = vadd.f32 %v360_v54, %v1705_v35 }
  0xfc   :  { %v310_v55 = vpop.f32.mrf.mxu1  ;;  %v419_v56 = vpop.f32.mrf.mxu3  ;;  %840 = vmatpush.msra.mxu0 %v829_v52 }
  0xfd   :  { %v469_v57 = vmax.f32 %v361_v31, 0.0  ;;  %v311_v59 = vadd.f32 %v310_v55, %v1684_v9  ;;  %v420_v60 = vadd.f32 %v419_v56, %v1708_v36 }
  0xfe   :  { %841 = vmatpush.msra.mxu0 %v828_v53 }
  0xff   :  { %v480_v61 = vmax.f32 %v311_v59, 0.0  ;;  %v470_v62 = vmax.f32 %v420_v60, 0.0  ;;  %719 = vmatmul.f32.gmra.mxu2 %v469_v57  ;;  %v826_v57 = vld [vmem:[%s1924_s6 + $0x48] sm:$0xff]  ;;  %v825_v60 = vld [vmem:[%s1924_s6 + $0x40] sm:$0xff] }
 0x100   :  { %616 = vmatmul.f32.gmra.mxu0 %v487_v58  ;;  %v824_v58 = vld [vmem:[%s1924_s6 + $0x38] sm:$0xff] }
 0x101   :  { %669 = vmatmul.f32.gmra.mxu1 %v480_v61  ;;  %778 = vmatmul.f32.gmra.mxu3 %v470_v62  ;;  %v823_v61 = vld [vmem:[%s1924_s6 + $0x30] sm:$0xff] }
 0x102   :  { %v363_v63 = vpop.f32.mrf.mxu2 }
 0x103   :  { %v364_v6 = vadd.f32 %v363_v63, %v1705_v35 }
 0x104   :  { %v313_v7 = vpop.f32.mrf.mxu1  ;;  %v422_v43 = vpop.f32.mrf.mxu3 }
 0x105   :  { %v473_v8 = vmax.f32 %v364_v6, 0.0  ;;  %v314_v10 = vadd.f32 %v313_v7, %v1684_v9  ;;  %v423_v12 = vadd.f32 %v422_v43, %v1708_v36  ;;  %v822_v43 = vld [vmem:[%s1924_s6 + $0x28] sm:$0xff] }
 0x107   :  { %v484_v11 = vmax.f32 %v314_v10, 0.0  ;;  %v474_v15 = vmax.f32 %v423_v12, 0.0  ;;  %722 = vmatmul.f32.gmra.mxu2 %v473_v8  ;;  %v821_v10 = vld [vmem:[%s1924_s6 + $0x20] sm:$0xff]  ;;  %v820_v12 = vld [vmem:[%s1924_s6 + $0x18] sm:$0xff] }
 0x108   :  { %619 = vmatmul.f32.gmra.mxu0 %v491_v13 }
 0x109   :  { %672 = vmatmul.f32.gmra.mxu1 %v484_v11  ;;  %781 = vmatmul.f32.gmra.mxu3 %v474_v15 }
 0x10a   :  { %v366_v16 = vpop.f32.mrf.mxu2 }
 0x10b   :  { %v367_v18 = vadd.f32 %v366_v16, %v1705_v35 }
 0x10c   :  { %v316_v19 = vpop.f32.mrf.mxu1  ;;  %v425_v20 = vpop.f32.mrf.mxu3 }
 0x10d   :  { %v477_v21 = vmax.f32 %v367_v18, 0.0  ;;  %v317_v23 = vadd.f32 %v316_v19, %v1684_v9  ;;  %v426_v24 = vadd.f32 %v425_v20, %v1708_v36  ;;  %v818_v20 = vld [vmem:[%s1924_s6 + $0x8] sm:$0xff] }
 0x10f   :  { %v488_v26 = vmax.f32 %v317_v23, 0.0  ;;  %v478_v50 = vmax.f32 %v426_v24, 0.0  ;;  %725 = vmatmul.f32.gmra.mxu2 %v477_v21 }
 0x110   :  { %622 = vmatmul.f32.gmra.mxu0 %v495_v25 }
 0x111   :  { %675 = vmatmul.f32.gmra.mxu1 %v488_v26  ;;  %784 = vmatmul.f32.gmra.mxu3 %v478_v50 }
 0x112   :  { %v369_v27 = vpop.f32.mrf.mxu2 }
 0x113   :  { %v370_v44 = vadd.f32 %v369_v27, %v1705_v35 }
 0x114   :  { %v319_v29 = vpop.f32.mrf.mxu1  ;;  %v428_v30 = vpop.f32.mrf.mxu3 }
 0x115   :  { %v481_v32 = vmax.f32 %v370_v44, 0.0  ;;  %v320_v33 = vadd.f32 %v319_v29, %v1684_v9  ;;  %v429_v34 = vadd.f32 %v428_v30, %v1708_v36 }
 0x117   :  { %v492_v37 = vmax.f32 %v320_v33, 0.0  ;;  %v482_v38 = vmax.f32 %v429_v34, 0.0  ;;  %728 = vmatmul.f32.gmra.mxu2 %v481_v32 }
 0x119   :  { %678 = vmatmul.f32.gmra.mxu1 %v492_v37  ;;  %787 = vmatmul.f32.gmra.mxu3 %v482_v38 }
 0x11a   :  { %v372_v17 = vpop.f32.mrf.mxu2 }
 0x11b   :  { %v373_v28 = vadd.f32 %v372_v17, %v1705_v35 }
 0x11c   :  { %v322_v42 = vpop.f32.mrf.mxu1  ;;  %v431_v45 = vpop.f32.mrf.mxu3 }
 0x11d   :  { %v485_v46 = vmax.f32 %v373_v28, 0.0  ;;  %v323_v47 = vadd.f32 %v322_v42, %v1684_v9  ;;  %v432_v48 = vadd.f32 %v431_v45, %v1708_v36  ;;  %v827_v9 = vld [vmem:[%s1924_s6 + $0x50] sm:$0xff] }
 0x11e   :  { %842 = vmatpush.msra.mxu0 %v827_v9 }
 0x11f   :  { %v496_v39 = vmax.f32 %v323_v47, 0.0  ;;  %v486_v51 = vmax.f32 %v432_v48, 0.0  ;;  %731 = vmatmul.f32.gmra.mxu2 %v485_v46 }
 0x120   :  { %843 = vmatpush.msra.mxu0 %v826_v57 }
 0x121   :  { %681 = vmatmul.f32.gmra.mxu1 %v496_v39  ;;  %790 = vmatmul.f32.gmra.mxu3 %v486_v51 }
 0x122   :  { %v375_v5 = vpop.f32.mrf.mxu2  ;;  %844 = vmatpush.msra.mxu0 %v825_v60 }
 0x123   :  { %v376_v54 = vadd.f32 %v375_v5, %v1705_v35 }
 0x124   :  { %v434_v31 = vpop.f32.mrf.mxu3  ;;  %845 = vmatpush.msra.mxu0 %v824_v58 }
 0x125   :  { %v489_v55 = vmax.f32 %v376_v54, 0.0  ;;  %v435_v56 = vadd.f32 %v434_v31, %v1708_v36  ;;  %v584_v13 = vpop.f32.mrf.mxu0 }
 0x126   :  { %846 = vmatpush.msra.mxu0 %v823_v61 }
 0x127   :  { %v490_v59 = vmax.f32 %v435_v56, 0.0  ;;  %734 = vmatmul.f32.gmra.mxu2 %v489_v55 }
 0x128   :  { %847 = vmatpush.msra.mxu0 %v822_v43 }
 0x129   :  { %793 = vmatmul.f32.gmra.mxu3 %v490_v59 }
 0x12a   :  { %v378_v62 = vpop.f32.mrf.mxu2  ;;  %848 = vmatpush.msra.mxu0 %v821_v10 }
 0x12b   :  { %v379_v14 = vadd.f32 %v378_v62, %v1705_v35 }
 0x12c   :  { %v437_v63 = vpop.f32.mrf.mxu3  ;;  %849 = vmatpush.msra.mxu0 %v820_v12 }
 0x12d   :  { %v493_v6 = vmax.f32 %v379_v14, 0.0  ;;  %v438_v7 = vadd.f32 %v437_v63, %v1708_v36  ;;  %v587_v24 = vpop.f32.mrf.mxu0 }
 0x12e   :  { %850 = vmatpush.msra.mxu0 %v819_v22 }
 0x12f   :  { %v494_v8 = vmax.f32 %v438_v7, 0.0  ;;  %737 = vmatmul.f32.gmra.mxu2 %v493_v6 }
 0x130   :  { %851 = vmatpush.msra.mxu0 %v818_v20 }
 0x131   :  { %796 = vmatmul.f32.gmra.mxu3 %v494_v8 }
 0x132   :  { %v381_v11 = vpop.f32.mrf.mxu2 }
 0x133   :  { %v382_v15 = vadd.f32 %v381_v11, %v1705_v35  ;;  %v817_v35 = vld [vmem:[%s1924_s6] sm:$0xff] }
 0x134   :  { %v440_v16 = vpop.f32.mrf.mxu3  ;;  %852 = vmatpush.msra.mxu0 %v817_v35 }
 0x135   :  { %v497_v18 = vmax.f32 %v382_v15, 0.0  ;;  %v441_v19 = vadd.f32 %v440_v16, %v1708_v36  ;;  %v590_v26 = vpop.f32.mrf.mxu0  ;;  %v1817_v36 = vld [vmem:[%s1923_s5] ss:$0 sm:$0xff] }
 0x136   :  { %v643_v21 = vpop.f32.mrf.mxu1  ;;  %v585_v27 = vadd.f32 %v1817_v36, %v584_v13  ;;  %v588_v33 = vadd.f32 %v1817_v36, %v587_v24  ;;  %v591_v42 = vadd.f32 %v1817_v36, %v590_v26 }
 0x137   :  { %v498_v23 = vmax.f32 %v441_v19, 0.0  ;;  %740 = vmatmul.f32.gmra.mxu2 %v497_v18 }
 0x138   :  { %v644_v44 = vadd.f32 %v643_v21, %v585_v27 }
 0x139   :  { %799 = vmatmul.f32.gmra.mxu3 %v498_v23 }
 0x13d   :  { %v593_v29 = vpop.f32.mrf.mxu0 }
 0x13e   :  { %v646_v25 = vpop.f32.mrf.mxu1  ;;  %v594_v52 = vadd.f32 %v1817_v36, %v593_v29 }
 0x13f   :  { %v647_v40 = vadd.f32 %v646_v25, %v588_v33 }
 0x145   :  { %v596_v17 = vpop.f32.mrf.mxu0 }
 0x146   :  { %v649_v50 = vpop.f32.mrf.mxu1  ;;  %v597_v62 = vadd.f32 %v1817_v36, %v596_v17 }
 0x147   :  { %v650_v49 = vadd.f32 %v649_v50, %v591_v42 }
 0x14d   :  { %v599_v9 = vpop.f32.mrf.mxu0 }
 0x14e   :  { %v652_v30 = vpop.f32.mrf.mxu1  ;;  %v600_v12 = vadd.f32 %v1817_v36, %v599_v9 }
 0x14f   :  { %v653_v55 = vadd.f32 %v652_v30, %v594_v52 }
 0x152   :  { %v702_v32 = vpop.f32.mrf.mxu2 }
 0x153   :  { %v703_v34 = vadd.f32 %v702_v32, %v644_v44 }
 0x154   :  { %v761_v37 = vpop.f32.mrf.mxu3 }
 0x155   :  { %v1821_v38 = vadd.f32 %v761_v37, %v703_v34  ;;  %v602_v61 = vpop.f32.mrf.mxu0 }
 0x156   :  { %v655_v46 = vpop.f32.mrf.mxu1  ;;  %v603_v21 = vadd.f32 %v1817_v36, %v602_v61 }
 0x157   :  { %v803_v41 = vmax.f32 %v1821_v38, 0.0  ;;  %v656_v6 = vadd.f32 %v655_v46, %v597_v62 }
 0x159   :  { %853 = vmatmul.f32.vlgmr.msra.gmra.mxu0 %v803_v41 }
 0x15a   :  { %v705_v28 = vpop.f32.mrf.mxu2 }
 0x15b   :  { %v706_v45 = vadd.f32 %v705_v28, %v647_v40 }
 0x15c   :  { %v764_v47 = vpop.f32.mrf.mxu3 }
 0x15d   :  { %v1827_v48 = vadd.f32 %v764_v47, %v706_v45  ;;  %v605_v11 = vpop.f32.mrf.mxu0 }
 0x15e   :  { %v658_v31 = vpop.f32.mrf.mxu1  ;;  %v606_v29 = vadd.f32 %v1817_v36, %v605_v11 }
 0x15f   :  { %v804_v39 = vmax.f32 %v1827_v48, 0.0  ;;  %v659_v15 = vadd.f32 %v658_v31, %v600_v12 }
 0x161   :  { %856 = vmatmul.f32.gmra.mxu0 %v804_v39 }
 0x162   :  { %v708_v51 = vpop.f32.mrf.mxu2 }
 0x163   :  { %v709_v53 = vadd.f32 %v708_v51, %v650_v49 }
 0x164   :  { %v767_v5 = vpop.f32.mrf.mxu3 }
 0x165   :  { %v1833_v54 = vadd.f32 %v767_v5, %v709_v53  ;;  %v608_v24 = vpop.f32.mrf.mxu0 }
 0x166   :  { %v661_v63 = vpop.f32.mrf.mxu1  ;;  %v609_v42 = vadd.f32 %v1817_v36, %v608_v24 }
 0x167   :  { %v805_v56 = vmax.f32 %v1833_v54, 0.0  ;;  %v662_v35 = vadd.f32 %v661_v63, %v603_v21 }
 0x169   :  { %859 = vmatmul.f32.gmra.mxu0 %v805_v56 }
 0x16a   :  { %v711_v57 = vpop.f32.mrf.mxu2 }
 0x16b   :  { %v712_v59 = vadd.f32 %v711_v57, %v653_v55 }
 0x16c   :  { %v770_v60 = vpop.f32.mrf.mxu3 }
 0x16d   :  { %v1838_v58 = vadd.f32 %v770_v60, %v712_v59  ;;  %v611_v37 = vpop.f32.mrf.mxu0 }
 0x16e   :  { %v664_v22 = vpop.f32.mrf.mxu1  ;;  %v612_v9 = vadd.f32 %v1817_v36, %v611_v37 }
 0x16f   :  { %v806_v14 = vmax.f32 %v1838_v58, 0.0  ;;  %v665_v32 = vadd.f32 %v664_v22, %v606_v29 }
 0x171   :  { %862 = vmatmul.f32.gmra.mxu0 %v806_v14 }
 0x172   :  { %v714_v7 = vpop.f32.mrf.mxu2 }
 0x173   :  { %v715_v43 = vadd.f32 %v714_v7, %v656_v6 }
 0x174   :  { %v773_v8 = vpop.f32.mrf.mxu3 }
 0x175   :  { %v1844_v10 = vadd.f32 %v773_v8, %v715_v43  ;;  %v614_v53 = vpop.f32.mrf.mxu0 }
 0x176   :  { %v667_v50 = vpop.f32.mrf.mxu1  ;;  %v615_v62 = vadd.f32 %v1817_v36, %v614_v53 }
 0x177   :  { %v807_v13 = vmax.f32 %v1844_v10, 0.0  ;;  %v668_v46 = vadd.f32 %v667_v50, %v609_v42  ;;  %v910_v10 = vld [vmem:[%s1919_s1] sm:$0xff]  ;;  %s1893_s1 = smov 0  }
 0x179   :  { %865 = vmatmul.f32.gmra.mxu0 %v807_v13 }
 0x17a   :  { %v717_v16 = vpop.f32.mrf.mxu2 }
 0x17b   :  { %v718_v18 = vadd.f32 %v717_v16, %v659_v15 }
 0x17c   :  { %v776_v19 = vpop.f32.mrf.mxu3 }
 0x17d   :  { %v1850_v20 = vadd.f32 %v776_v19, %v718_v18  ;;  %v617_v6 = vpop.f32.mrf.mxu0 }
 0x17e   :  { %v670_v28 = vpop.f32.mrf.mxu1  ;;  %v618_v22 = vadd.f32 %v1817_v36, %v617_v6 }
 0x17f   :  { %v808_v23 = vmax.f32 %v1850_v20, 0.0  ;;  %v671_v55 = vadd.f32 %v670_v28, %v612_v9 }
 0x181   :  { %868 = vmatmul.f32.gmra.mxu0 %v808_v23 }
 0x182   :  { %v720_v25 = vpop.f32.mrf.mxu2 }
 0x183   :  { %v721_v26 = vadd.f32 %v720_v25, %v662_v35 }
 0x184   :  { %v779_v27 = vpop.f32.mrf.mxu3 }
 0x185   :  { %v1856_v44 = vadd.f32 %v779_v27, %v721_v26  ;;  %v620_v19 = vpop.f32.mrf.mxu0 }
 0x186   :  { %v673_v31 = vpop.f32.mrf.mxu1  ;;  %v621_v50 = vadd.f32 %v1817_v36, %v620_v19 }
 0x187   :  { %v809_v30 = vmax.f32 %v1856_v44, 0.0  ;;  %v674_v7 = vadd.f32 %v673_v31, %v615_v62 }
 0x189   :  { %871 = vmatmul.f32.gmra.mxu0 %v809_v30 }
 0x18a   :  { %v723_v33 = vpop.f32.mrf.mxu2 }
 0x18b   :  { %v724_v34 = vadd.f32 %v723_v33, %v665_v32 }
 0x18c   :  { %v782_v40 = vpop.f32.mrf.mxu3 }
 0x18d   :  { %v1862_v17 = vadd.f32 %v782_v40, %v724_v34  ;;  %v623_v34 = vpop.f32.mrf.mxu0 }
 0x18e   :  { %v676_v43 = vpop.f32.mrf.mxu1  ;;  %v624_v28 = vadd.f32 %v1817_v36, %v623_v34  ;;  %v1234_v36 = vld [vmem:[%s1925_s7] ss:$0 sm:$0xff] }
 0x18f   :  { %v810_v45 = vmax.f32 %v1862_v17, 0.0  ;;  %v677_v18 = vadd.f32 %v676_v43, %v618_v22 }
 0x191   :  { %874 = vmatmul.f32.gmra.mxu0 %v810_v45 }
 0x192   :  { %v726_v47 = vpop.f32.mrf.mxu2 }
 0x193   :  { %v727_v49 = vadd.f32 %v726_v47, %v668_v46 }
 0x194   :  { %v785_v51 = vpop.f32.mrf.mxu3 }
 0x195   :  { %v786_v52 = vadd.f32 %v785_v51, %v727_v49 }
 0x196   :  { %v679_v24 = vpop.f32.mrf.mxu1 }
 0x197   :  { %v811_v5 = vmax.f32 %v786_v52, 0.0  ;;  %v680_v29 = vadd.f32 %v679_v24, %v621_v50 }
 0x199   :  { %877 = vmatmul.f32.gmra.mxu0 %v811_v5 }
 0x19a   :  { %v729_v57 = vpop.f32.mrf.mxu2 }
 0x19b   :  { %v730_v59 = vadd.f32 %v729_v57, %v671_v55 }
 0x19c   :  { %v788_v60 = vpop.f32.mrf.mxu3 }
 0x19d   :  { %v789_v61 = vadd.f32 %v788_v60, %v730_v59 }
 0x19e   :  { %v682_v17 = vpop.f32.mrf.mxu1 }
 0x19f   :  { %v812_v63 = vmax.f32 %v789_v61, 0.0  ;;  %v683_v46 = vadd.f32 %v682_v17, %v624_v28 }
 0x1a1   :  { %880 = vmatmul.f32.gmra.mxu0 %v812_v63 }
 0x1a2   :  { %v732_v8 = vpop.f32.mrf.mxu2 }
 0x1a3   :  { %v733_v12 = vadd.f32 %v732_v8, %v674_v7 }
 0x1a4   :  { %v791_v11 = vpop.f32.mrf.mxu3 }
 0x1a5   :  { %v792_v15 = vadd.f32 %v791_v11, %v733_v12 }
 0x1a7   :  { %v813_v16 = vmax.f32 %v792_v15, 0.0  ;;  %v1378_v15 = vmov 0.0  }
 0x1a9   :  { %883 = vmatmul.f32.gmra.mxu0 %v813_v16 }
 0x1aa   :  { %v735_v21 = vpop.f32.mrf.mxu2 }
 0x1ab   :  { %v736_v35 = vadd.f32 %v735_v21, %v677_v18 }
 0x1ac   :  { %v794_v25 = vpop.f32.mrf.mxu3 }
 0x1ad   :  { %v795_v26 = vadd.f32 %v794_v25, %v736_v35 }
 0x1af   :  { %v814_v27 = vmax.f32 %v795_v26, 0.0 }
 0x1b1   :  { %886 = vmatmul.f32.gmra.mxu0 %v814_v27 }
 0x1b2   :  { %v738_v32 = vpop.f32.mrf.mxu2 }
 0x1b3   :  { %v739_v33 = vadd.f32 %v738_v32, %v680_v29 }
 0x1b4   :  { %v797_v37 = vpop.f32.mrf.mxu3 }
 0x1b5   :  { %v798_v40 = vadd.f32 %v797_v37, %v739_v33 }
 0x1b7   :  { %v815_v42 = vmax.f32 %v798_v40, 0.0 }
 0x1b9   :  { %889 = vmatmul.f32.gmra.mxu0 %v815_v42 }
 0x1ba   :  { %v741_v47 = vpop.f32.mrf.mxu2 }
 0x1bb   :  { %v742_v49 = vadd.f32 %v741_v47, %v683_v46 }
 0x1bc   :  { %v800_v51 = vpop.f32.mrf.mxu3 }
 0x1bd   :  { %v801_v52 = vadd.f32 %v800_v51, %v742_v49 }
 0x1bf   :  { %v816_v53 = vmax.f32 %v801_v52, 0.0 }
 0x1c1   :  { %892 = vmatmul.f32.gmra.mxu0 %v816_v53  ;;  %917 = vmatpush.msrb.mxu1 %v816_v53 }
 0x1c3   :  { %918 = vmatpush.msrb.mxu1 %v815_v42 }
 0x1c5   :  { %919 = vmatpush.msrb.mxu1 %v814_v27 }
 0x1c7   :  { %920 = vmatpush.msrb.mxu1 %v813_v16 }
 0x1c9   :  { %921 = vmatpush.msrb.mxu1 %v812_v63 }
 0x1cb   :  { %922 = vmatpush.msrb.mxu1 %v811_v5 }
 0x1cd   :  { %923 = vmatpush.msrb.mxu1 %v810_v45 }
 0x1cf   :  { %924 = vmatpush.msrb.mxu1 %v809_v30 }
 0x1d1   :  { %925 = vmatpush.msrb.mxu1 %v808_v23 }
 0x1d3   :  { %926 = vmatpush.msrb.mxu1 %v807_v13 }
 0x1d5   :  { %927 = vmatpush.msrb.mxu1 %v806_v14 }
 0x1d6   :  { %v854_v9 = vpop.f32.mrf.mxu0 }
 0x1d7   :  { %v855_v31 = vadd.f32 %v1234_v36, %v854_v9  ;;  %928 = vmatpush.msrb.mxu1 %v805_v56 }
 0x1d9   :  { %896 = vst [vmem:[#allocation2] sm:$0xff] %v855_v31  ;;  %929 = vmatpush.msrb.mxu1 %v804_v39 }
 0x1db   :  { %930 = vmatpush.msrb.mxu1 %v803_v41 }
 0x1dc   :  { %1176 = vmatmul.msk.f32.vlgmr.msrb.gmra.mxu1 %vm911_vm1, %v910_v10 }
 0x1de   :  { %v857_v58 = vpop.f32.mrf.mxu0 }
 0x1df   :  { %v858_v14 = vadd.f32 %v1234_v36, %v857_v58 }
 0x1e1   :  { %897 = vst [vmem:[#allocation2 + $0x8] sm:$0xff] %v858_v14 }
 0x1e6   :  { %v860_v13 = vpop.f32.mrf.mxu0 }
 0x1e7   :  { %v861_v20 = vadd.f32 %v1234_v36, %v860_v13 }
 0x1e9   :  { %898 = vst [vmem:[#allocation2 + $0x10] sm:$0xff] %v861_v20 }
 0x1ee   :  { %v863_v54 = vpop.f32.mrf.mxu0 }
 0x1ef   :  { %v864_v56 = vadd.f32 %v1234_v36, %v863_v54 }
 0x1f1   :  { %899 = vst [vmem:[#allocation2 + $0x18] sm:$0xff] %v864_v56 }
 0x1f6   :  { %v866_v48 = vpop.f32.mrf.mxu0 }
 0x1f7   :  { %v867_v39 = vadd.f32 %v1234_v36, %v866_v48 }
 0x1f9   :  { %900 = vst [vmem:[#allocation2 + $0x20] sm:$0xff] %v867_v39 }
 0x1fe   :  { %v869_v23 = vpop.f32.mrf.mxu0 }
 0x1ff   :  { %v870_v44 = vadd.f32 %v1234_v36, %v869_v23 }
 0x201   :  { %901 = vst [vmem:[#allocation2 + $0x28] sm:$0xff] %v870_v44 }
 0x206   :  { %v872_v30 = vpop.f32.mrf.mxu0 }
 0x207   :  { %v873_v45 = vadd.f32 %v1234_v36, %v872_v30 }
 0x209   :  { %902 = vst [vmem:[#allocation2 + $0x30] sm:$0xff] %v873_v45 }
 0x20e   :  { %v875_v38 = vpop.f32.mrf.mxu0 }
 0x20f   :  { %v876_v41 = vadd.f32 %v1234_v36, %v875_v38 }
 0x211   :  { %903 = vst [vmem:[#allocation2 + $0x38] sm:$0xff] %v876_v41 }
 0x216   :  { %v878_v5 = vpop.f32.mrf.mxu0 }
 0x217   :  { %v879_v55 = vadd.f32 %v1234_v36, %v878_v5 }
 0x219   :  { %904 = vst [vmem:[#allocation2 + $0x40] sm:$0xff] %v879_v55 }
 0x21e   :  { %v881_v57 = vpop.f32.mrf.mxu0 }
 0x21f   :  { %v882_v59 = vadd.f32 %v1234_v36, %v881_v57 }
 0x221   :  { %905 = vst [vmem:[#allocation2 + $0x48] sm:$0xff] %v882_v59 }
 0x226   :  { %v884_v60 = vpop.f32.mrf.mxu0 }
 0x227   :  { %v885_v61 = vadd.f32 %v1234_v36, %v884_v60 }
 0x229   :  { %906 = vst [vmem:[#allocation2 + $0x50] sm:$0xff] %v885_v61 }
 0x22e   :  { %v887_v62 = vpop.f32.mrf.mxu0 }
 0x22f   :  { %v888_v63 = vadd.f32 %v1234_v36, %v887_v62 }
 0x231   :  { %907 = vst [vmem:[#allocation2 + $0x58] sm:$0xff] %v888_v63 }
 0x236   :  { %v890_v6 = vpop.f32.mrf.mxu0 }
 0x237   :  { %v891_v7 = vadd.f32 %v1234_v36, %v890_v6 }
 0x239   :  { %908 = vst [vmem:[#allocation2 + $0x60] sm:$0xff] %v891_v7 }
 0x23e   :  { %v893_v43 = vpop.f32.mrf.mxu0 }
 0x23f   :  { %v894_v8 = vadd.f32 %v1234_v36, %v893_v43 }
 0x241   :  { %909 = vst [vmem:[#allocation2 + $0x68] sm:$0xff] %v894_v8 }
 0x259   :  { %v932_v12 = vpop.f32.mrf.mxu1 }
 0x25a   :  { %v1891_v11 = vmul.f32 0.071428575, %v932_v12 }
 0x25b LB: > { %972 = vmatpush.msra.mxu0 %v1498_v3  ;;  %s1394_s7 = smov 96   ;;  %vm957_vm2 = vcmask 261120   ;;  %v952_v16 = vperm.slane %v1503_v4, 0  ;;  %s1395_s15 = smov 64   ;;  %s1384_s1 = sphi %s1893_s1, %s946_s1   ;;  %v1380_v15 = vphi %v1378_v15, %v1379_v15  }
 0x25c   : > { %955 = vrot.lane.b32.xlu0 %v1380_v15, %s1394_s7  ;;  %s1177_s11 = sshll.u32 %s1384_s1, 3  ;;  %s946_s1 = sadd.s32 1, %s1384_s1  }
 0x25d   : > { %973 = vmatpush.msra.mxu0 %v1493_v2  ;;  %s949_s18 = scalar_lea.vmem [#allocation2], %s1177_s11  ;;  %p943_p0 = scmp.ge.s32.totalorder %s946_s1, 14  }
 0x25e   : > { %v950_v21 = vld [vmem:[%s949_s18] sm:$0xff]  ;;  %v1034_v10 = vld [vmem:[#allocation8 + $0x78] sm:$0xff] (%p943_p0)  ;;  %s1396_s16 = smov (%p943_p0), 96   ;;  %v1032_v14 = vld [vmem:[#allocation8 + $0x68] sm:$0xff] (%p943_p0)  ;;  %s1397_s20 = smov (%p943_p0), [#allocation11]  }
 0x25f   : > { %974 = vmatpush.msra.mxu0 %v1488_v1  ;;  %v1033_v58 = vld [vmem:[#allocation8 + $0x70] sm:$0xff] (%p943_p0)  ;;  %1065 = vmatpush.msra.mxu1 (%p943_p0), %v1034_v10  ;;  %v1031_v13 = vld [vmem:[#allocation8 + $0x60] sm:$0xff] (%p943_p0)  ;;  %v1038_v20 = vld [vmem:[#allocation9 + $0x18] sm:$0xff] (%p943_p0)  ;;  %s1096_s8 = sshll.u32 (%p943_p0), %s1397_s20, 4  ;;  %s1098_s4 = sshll.u32 (%p943_p0), %s1931_s13, 4  ;;  %s1097_s8 = int_to_ptr.vmem [resolvable:$true] %s1096_s8  ;;  %s1099_s4 = int_to_ptr.hbm [resolvable:$true] %s1098_s4 }
 0x260   :  { %v1037_v54 = vld [vmem:[#allocation9 + $0x10] sm:$0xff] (%p943_p0)  ;;  %v1030_v56 = vld [vmem:[#allocation8 + $0x58] sm:$0xff] (%p943_p0)  ;;  %v1036_v48 = vld [vmem:[#allocation9 + $0x8] sm:$0xff] (%p943_p0) }
 0x261   : > { %975 = vmatpush.msra.mxu0 %v1483_v0  ;;  %1066 = vmatpush.msra.mxu1 (%p943_p0), %v1033_v58  ;;  %v1029_v39 = vld [vmem:[#allocation8 + $0x50] sm:$0xff] (%p943_p0)  ;;  %v1028_v23 = vld [vmem:[#allocation8 + $0x48] sm:$0xff] (%p943_p0)  ;;  %v1027_v0 = vld [vmem:[#allocation8 + $0x40] sm:$0xff] (%p943_p0) }
 0x262   :  { %v1026_v1 = vld [vmem:[#allocation8 + $0x38] sm:$0xff] (%p943_p0)  ;;  %v1025_v2 = vld [vmem:[#allocation8 + $0x30] sm:$0xff] (%p943_p0)  ;;  %v1024_v3 = vld [vmem:[#allocation8 + $0x28] sm:$0xff] (%p943_p0) }
 0x263   :  { %1067 = vmatpush.msra.mxu1 (%p943_p0), %v1032_v14  ;;  %v1023_v4 = vld [vmem:[#allocation8 + $0x20] sm:$0xff] (%p943_p0)  ;;  %v1022_v44 = vld [vmem:[#allocation8 + $0x18] sm:$0xff] (%p943_p0)  ;;  %v1021_v30 = vld [vmem:[#allocation8 + $0x10] sm:$0xff] (%p943_p0) }
 0x264   :  { %v1020_v45 = vld [vmem:[#allocation8 + $0x8] sm:$0xff] (%p943_p0)  ;;  %v1035_v38 = vld [vmem:[#allocation9] sm:$0xff] (%p943_p0)  ;;  %v1241_v57 = vld [vmem:[%s1930_s12] ss:$0 sm:$0xff] (%p943_p0) }
 0x265   :  { %1068 = vmatpush.msra.mxu1 (%p943_p0), %v1031_v13  ;;  %v1019_v41 = vld [vmem:[#allocation8] sm:$0xff] (%p943_p0) }
 0x267   :  { %1069 = vmatpush.msra.mxu1 (%p943_p0), %v1030_v56 }
 0x269   :  { %1070 = vmatpush.msra.mxu1 (%p943_p0), %v1029_v39 }
 0x26b   :  { %1071 = vmatpush.msra.mxu1 (%p943_p0), %v1028_v23 }
 0x26d   :  { %1072 = vmatpush.msra.mxu1 (%p943_p0), %v1027_v0 }
 0x26f   :  { %1073 = vmatpush.msra.mxu1 (%p943_p0), %v1026_v1 }
 0x271   :  { %1074 = vmatpush.msra.mxu1 (%p943_p0), %v1025_v2 }
 0x273   :  { %1075 = vmatpush.msra.mxu1 (%p943_p0), %v1024_v3 }
 0x275   :  { %1076 = vmatpush.msra.mxu1 (%p943_p0), %v1023_v4 }
 0x277   :  { %1077 = vmatpush.msra.mxu1 (%p943_p0), %v1022_v44 }
 0x279   :  { %1078 = vmatpush.msra.mxu1 (%p943_p0), %v1021_v30 }
 0x27b   :  { %1079 = vmatpush.msra.mxu1 (%p943_p0), %v1020_v45 }
 0x27d   :  { %1080 = vmatpush.msra.mxu1 (%p943_p0), %v1019_v41 }
 0x27e   :  { %1081 = vmatmul.f32.vlgmr.msra.gmra.mxu1 (%p943_p0), %v1891_v11 }
 0x2ce   : > { %v956_v22 = vpop.permute.xlu0 %955 }
 0x2cf   : > { %1178 = vmatmul.msk.f32.vlgmr.msra.gmra.mxu0 %vm957_vm2, %v956_v22 }
 0x2d0   :  { %1057 = vmatpush.msra.mxu0 (%p943_p0), %v1038_v20 }
 0x2d2   :  { %1058 = vmatpush.msra.mxu0 (%p943_p0), %v1037_v54 }
 0x2d4   :  { %1059 = vmatpush.msra.mxu0 (%p943_p0), %v1036_v48 }
 0x2d6   :  { %1060 = vmatpush.msra.mxu0 (%p943_p0), %v1035_v38 }
 0x2fb   :  { %v1082_v55 = vpop.f32.mrf.mxu1 (%p943_p0) }
 0x34c   : > { %v977_v18 = vpop.f32.mrf.mxu0 }
 0x34d   : > { %v978_v19 = vadd.f32 %v977_v18, %v952_v16 }
 0x34f   : > { %1001 = vrot.lane.b32.xlu0 %v978_v19, %s1395_s15  ;;  %v980_v35 = vadd.f32 %v978_v19, %v950_v21 }
 0x351   : > { %v1179_v24 = vmul.f32 -1.442695, %v980_v35 }
 0x353   : > { %1235 = vpow2.f32 %v1179_v24 }
 0x359   : > { %v1236_v25 = vpop.eup %1235 }
 0x35a   : > { %v984_v26 = vadd.f32 1.0, %v1236_v25 }
 0x35c   : > { %1237 = vrcp.f32 %v984_v26  ;;  %v996_v34 = vand.u32 2147483648, %v984_v26  ;;  %vm990_vm4 = vweird.f32 %v984_v26  ;;  %v994_v37 = vand.u32 2147483647, %v984_v26 }
 0x35e   : > { %v997_v17 = vor.u32 1.1754944e-38, %v996_v34  ;;  %vm995_vm6 = vcmp.eq.f32.partialorder %v994_v37, 8.507059e+37 }
 0x362   : > { %v1238_v50 = vpop.eup %1237 }
 0x363   : > { %v986_v27 = vmul.f32 %v1238_v50, %v984_v26  ;;  %vm991_vm3 = vweird.f32 %v1238_v50 }
 0x364   : > { %vm992_vm5 = vmor %vm990_vm4, %vm991_vm3 }
 0x365   : > { %v987_v29 = vsub.f32 1.0, %v986_v27 }
 0x367   : > { %v988_v32 = vmul.f32 %v1238_v50, %v987_v29 }
 0x369   : > { %v989_v33 = vadd.f32 %v1238_v50, %v988_v32 }
 0x36b   : > { %v993_v40 = vsel %vm992_vm5, %v1238_v50, %v989_v33 }
 0x36c   : > { %v998_v42 = vsel %vm995_vm6, %v997_v17, %v993_v40 }
 0x36d   : > { %v1011_v52 = vsub.f32 1.0, %v998_v42  ;;  %v1017_v36 = vmul.f32 %v1380_v15, %v998_v42 }
 0x3c1   : > { %v1002_v28 = vpop.permute.xlu0 %1001 }
 0x3c2   : > { %v1004_v46 = vmul.f32 %v1002_v28, %v998_v42 }
 0x3c4   : > { %1006 = vrot.lane.b32.xlu1 %v1004_v46, %s1395_s15 }
 0x436   : > { %v1007_v47 = vpop.permute.xlu1 %1006 }
 0x437   : > { %v1009_v49 = vadd.f32 %v1007_v47, %v950_v21 }
 0x439   : > { %1239 = vtanh.f32 %v1009_v49 }
 0x43f   : > { %v1240_v51 = vpop.eup %1239 }
 0x440   : > { %1013 = vrot.lane.b32.xlu1 %v1240_v51, %s1394_s7 }
 0x4b2   : > { %v1014_v53 = vpop.permute.xlu1 %1013 }
 0x4b3   : > { %v1016_v9 = vmul.f32 %v1014_v53, %v1011_v52  ;;  %945 = sbr.rel (!%p943_p0) target bundleno = 603 (0x25b), region = 96 }
 0x4b5   : > { %v1018_v31 = vadd.f32 %v1017_v36, %v1016_v9  }
 0x4b7   : > { %v1379_v15 = vmov %v1018_v31   ;;  %1040 = vrot.lane.b32.xlu0 (%p943_p0), %v1018_v31, %s1396_s16 }
 0x529   :  { %v1041_v5 = vpop.permute.xlu0 %1040 }
 0x52a   :  { %1180 = vmatmul.msk.f32.vlgmr.msra.gmra.mxu0 %vm957_vm2, %v1041_v5 }
 0x5a7   :  { %v1062_v59 = vpop.f32.mrf.mxu0 }
 0x5a8   :  { %v1083_v60 = vadd.f32 %v1082_v55, %v1062_v59 }
 0x5aa   :  { %v1089_v61 = vadd.f32 %v1241_v57, %v1083_v60 }
 0x5ac   :  { %1090 = vst [vmem:[#allocation11] sm:$0xff] %v1089_v61 }
 0x5ad   :  { %1101 = dma.vmem_to_hbm [thread:$0]  %s1097_s8, 128, %s1099_s4, [#allocation5]  }
 0x5ae   :  { %1376 = dma.done.wait [#allocation5], 128  }
 0x5af   :  { %1377 = vsyncadd [#allocation5], 4294967168 }
 0x5b0   :  { %1106 = vsyncpa [#allocation4], 1 }
 0x5b1   :  { %1107 = vsyncpa [#allocation7], 1 }
 0x5b2   :  { %1108 = vsyncpa [#allocation10], 1 }
 0x5b3   :  { %1109 = vsyncpa [#allocation5], 1 }

</bundles_post_ra>
